<compile_context>
chip_gen: v7x
topology: tpu7x:2x2x1
jax: 0.10.0
libtpu: 0.0.40
codegen_flags: <defaults>
</compile_context>

<pallas_src>
import math
import functools

import jax
import jax.numpy as jnp
from jax.experimental import pallas as pl
from jax.experimental.pallas import tpu as pltpu

# ----------------------------- configuration -------------------------------
D_MODEL = 32
NHEAD = 4
DIM_FF = 64
L_TGT = 8     # target sequence length
S_MEM = 16    # memory sequence length
BATCH = 2
EPS = 1e-5


# ------------------------------- kernel ------------------------------------
def _decoder_layer_kernel(
    tgt_ref, qpos_ref, mem_ref, pos_ref,
    sa_wqk_ref, sa_bqk_ref, sa_wv_ref, sa_bv_ref, sa_wo_ref, sa_bo_ref,
    ca_wq_ref, ca_bq_ref, ca_wk_ref, ca_bk_ref, ca_wv_ref, ca_bv_ref,
    ca_wo_ref, ca_bo_ref,
    w1_ref, b1_ref, w2_ref, b2_ref,
    ln1w_ref, ln1b_ref, ln2w_ref, ln2b_ref, ln3w_ref, ln3b_ref,
    out_ref, attn_ref, cat_ref,
    *, n, l_tgt, s_mem, d_model, nhead,
):
    hd = d_model // nhead

    tgt = tgt_ref[...]      # (N*L, D)
    qpos = qpos_ref[...]    # (N*L, D)
    mem = mem_ref[...]      # (N*S, D)
    pos = pos_ref[...]      # (N*S, D)

    def layer_norm(x, w, b):
        mu = jnp.mean(x, axis=-1, keepdims=True)
        xc = x - mu
        var = jnp.mean(xc * xc, axis=-1, keepdims=True)
        return xc * jax.lax.rsqrt(var + EPS) * w + b

    def split_heads(x2, rows):
        # (N*rows, D) -> (nhead*N, rows, hd); head h occupies rows [h*N,(h+1)*N)
        x3 = x2.reshape(n, rows, d_model)
        return jnp.concatenate(
            [x3[:, :, h * hd:(h + 1) * hd] for h in range(nhead)], axis=0)

    def attention(q2, k2, v2, lk, wo, bo, want_attn):
        # q2 already carries the 1/sqrt(hd) scale (folded into the weights).
        qh = split_heads(q2, l_tgt)                   # (H*N, L, hd)
        kh = split_heads(k2, lk)                      # (H*N, lk, hd)
        vh = split_heads(v2, lk)                      # (H*N, lk, hd)
        # One batched score matmul + ONE softmax for all heads & batches.
        s = jnp.einsum('bqd,bkd->bqk', qh, kh,
                       preferred_element_type=jnp.float32)     # (H*N, L, lk)
        s = s - jnp.max(s, axis=-1, keepdims=True)
        e = jnp.exp(s)
        denom = jnp.sum(e, axis=-1, keepdims=True)
        r = pl.reciprocal(denom, approx=True)          # EUP vrcp (own VLIW slot)
        r = r * (2.0 - denom * r)                      # one Newton step -> ~f32
        a = e * r                                      # (H*N, L, lk)
        o = jnp.einsum('bqk,bkd->bqd', a, vh,
                       preferred_element_type=jnp.float32)     # (H*N, L, hd)
        # Concat heads into the VMEM scratch buffer, then ONE output projection.
        for h in range(nhead):
            cat_ref[:, h * hd:(h + 1) * hd] = (
                o[h * n:(h + 1) * n].reshape(n * l_tgt, hd))
        proj = jnp.dot(cat_ref[...], wo,
                       preferred_element_type=jnp.float32) + bo
        if want_attn:
            attn_sum = a[0:n]
            for h in range(1, nhead):
                attn_sum = attn_sum + a[h * n:(h + 1) * n]
            return proj, attn_sum * (1.0 / nhead)      # (N, L, lk)
        return proj, None

    # ---- self-attention block (dropout1 = identity) ----
    qk_in = tgt + qpos
    qk = jnp.dot(qk_in, sa_wqk_ref[...],
                 preferred_element_type=jnp.float32) + sa_bqk_ref[...]  # fused Q|K
    v2 = jnp.dot(tgt, sa_wv_ref[...],
                 preferred_element_type=jnp.float32) + sa_bv_ref[...]
    sa_out, _ = attention(qk[:, :d_model], qk[:, d_model:], v2, l_tgt,
                          sa_wo_ref[...], sa_bo_ref[...], want_attn=False)
    x = layer_norm(tgt + sa_out, ln1w_ref[...], ln1b_ref[...])

    # ---- cross-attention block (dropout2 = identity) ----
    q2 = jnp.dot(x + qpos, ca_wq_ref[...],
                 preferred_element_type=jnp.float32) + ca_bq_ref[...]
    k2 = jnp.dot(mem + pos, ca_wk_ref[...],
                 preferred_element_type=jnp.float32) + ca_bk_ref[...]
    v2 = jnp.dot(mem, ca_wv_ref[...],
                 preferred_element_type=jnp.float32) + ca_bv_ref[...]
    ca_out, attn_avg = attention(q2, k2, v2, s_mem,
                                 ca_wo_ref[...], ca_bo_ref[...], want_attn=True)
    x = layer_norm(x + ca_out, ln2w_ref[...], ln2b_ref[...])

    # ---- feed-forward block (dropout / dropout3 = identity) ----
    h1 = jnp.maximum(
        jnp.dot(x, w1_ref[...], preferred_element_type=jnp.float32) + b1_ref[...],
        0.0)
    ff = jnp.dot(h1, w2_ref[...], preferred_element_type=jnp.float32) + b2_ref[...]
    x = layer_norm(x + ff, ln3w_ref[...], ln3b_ref[...])

    out_ref[...] = x            # (N*L, D)
    attn_ref[...] = attn_avg    # (N, L, S)


# ------------------------------- wrapper ------------------------------------
def transformer_decoder_layer(tgt, memory, params, pos, query_pos,
                              *, d_model=D_MODEL, nhead=NHEAD):
    """tgt, query_pos: (L, N, D); memory, pos: (S, N, D).

    Returns (tgt_out (L, N, D), attn_maps (N, L, S)) matching the PyTorch module.
    """
    L, N, _ = tgt.shape
    S = memory.shape[0]
    hd = d_model // nhead
    dim_ff = params["w1"].shape[0]
    scale = 1.0 / math.sqrt(hd)

    # Batch-major, rows flattened: every projection is one 2D matmul.
    tgt2 = jnp.transpose(tgt, (1, 0, 2)).reshape(N * L, d_model)
    qpos2 = jnp.transpose(query_pos, (1, 0, 2)).reshape(N * L, d_model)
    mem2 = jnp.transpose(memory, (1, 0, 2)).reshape(N * S, d_model)
    pos2 = jnp.transpose(pos, (1, 0, 2)).reshape(N * S, d_model)

    # Pre-orient weights once at the XLA level: pre-transpose for jnp.dot,
    # fuse the self-attn Q/K projections, fold the 1/sqrt(hd) scale into Q.
    sa_iw, sa_ib = params["sa_in_w"], params["sa_in_b"]
    ca_iw, ca_ib = params["ca_in_w"], params["ca_in_b"]
    q_scale = jnp.concatenate([jnp.full((d_model,), scale, jnp.float32),
                               jnp.ones((d_model,), jnp.float32)])
    sa_wqk = sa_iw[:2 * d_model].T * q_scale          # (D, 2D): [Q | K] columns
    sa_bqk = sa_ib[:, :2 * d_model] * q_scale         # (1, 2D)
    sa_wv = sa_iw[2 * d_model:].T                     # (D, D)
    sa_bv = sa_ib[:, 2 * d_model:]                    # (1, D)
    sa_wo = params["sa_out_w"].T                      # (D, D)
    sa_bo = params["sa_out_b"]                        # (1, D)
    ca_wq = ca_iw[:d_model].T * scale
    ca_bq = ca_ib[:, :d_model] * scale
    ca_wk = ca_iw[d_model:2 * d_model].T
    ca_bk = ca_ib[:, d_model:2 * d_model]
    ca_wv = ca_iw[2 * d_model:].T
    ca_bv = ca_ib[:, 2 * d_model:]
    ca_wo = params["ca_out_w"].T
    ca_bo = params["ca_out_b"]
    w1t = params["w1"].T                              # (D, FF)
    w2t = params["w2"].T                              # (FF, D)

    inputs = (
        tgt2, qpos2, mem2, pos2,
        sa_wqk, sa_bqk, sa_wv, sa_bv, sa_wo, sa_bo,
        ca_wq, ca_bq, ca_wk, ca_bk, ca_wv, ca_bv, ca_wo, ca_bo,
        w1t, params["b1"], w2t, params["b2"],
        params["ln1_w"], params["ln1_b"], params["ln2_w"], params["ln2_b"],
        params["ln3_w"], params["ln3_b"],
    )

    flops = 2 * (
        N * L * d_model * (2 * d_model)      # self-attn fused Q/K projection
        + N * L * d_model * d_model          # self-attn V projection
        + 2 * N * nhead * L * L * hd         # self-attn scores + A@V
        + N * L * d_model * d_model          # self-attn output projection
        + N * L * d_model * d_model          # cross-attn Q projection
        + 2 * N * S * d_model * d_model      # cross-attn K/V projections
        + 2 * N * nhead * L * S * hd         # cross-attn scores + A@V
        + N * L * d_model * d_model          # cross-attn output projection
        + 2 * N * L * d_model * dim_ff       # FFN
    )
    transcendentals = N * nhead * L * (L + S) + 3 * N * L + 2 * N * nhead * L
    bytes_accessed = 4 * (sum(int(x.size) for x in inputs)
                          + N * L * d_model + N * L * S)

    kernel = functools.partial(
        _decoder_layer_kernel, n=N, l_tgt=L, s_mem=S, d_model=d_model, nhead=nhead)

    vmem = pltpu.MemorySpace.VMEM
    out_flat, attn = pl.pallas_call(
        kernel,
        out_shape=(jax.ShapeDtypeStruct((N * L, d_model), jnp.float32),
                   jax.ShapeDtypeStruct((N, L, S), jnp.float32)),
        in_specs=[pl.BlockSpec(memory_space=vmem) for _ in inputs],
        out_specs=(pl.BlockSpec(memory_space=vmem),
                   pl.BlockSpec(memory_space=vmem)),
        scratch_shapes=[pltpu.VMEM((N * L, d_model), jnp.float32)],  # head-concat buffer
        cost_estimate=pl.CostEstimate(flops=flops,
                                      transcendentals=transcendentals,
                                      bytes_accessed=bytes_accessed),
    )(*inputs)

    out = jnp.transpose(out_flat.reshape(N, L, d_model), (1, 0, 2))
    return out, attn


# --------------------------- parameter creation ------------------------------
def make_params(key, d_model=D_MODEL, dim_ff=DIM_FF):
    ks = jax.random.split(key, 12)
    scale = 0.05

    def rnd(k, shape):
        return (scale * jax.random.normal(k, shape)).astype(jnp.float32)

    return {
        # self attention
        "sa_in_w": rnd(ks[0], (3 * d_model, d_model)),
        "sa_in_b": rnd(ks[1], (1, 3 * d_model)),
        "sa_out_w": rnd(ks[2], (d_model, d_model)),
        "sa_out_b": rnd(ks[3], (1, d_model)),
        # cross attention
        "ca_in_w": rnd(ks[4], (3 * d_model, d_model)),
        "ca_in_b": rnd(ks[5], (1, 3 * d_model)),
        "ca_out_w": rnd(ks[6], (d_model, d_model)),
        "ca_out_b": rnd(ks[7], (1, d_model)),
        # FFN
        "w1": rnd(ks[8], (dim_ff, d_model)),
        "b1": rnd(ks[9], (1, dim_ff)),
        "w2": rnd(ks[10], (d_model, dim_ff)),
        "b2": rnd(ks[11], (1, d_model)),
        # layer norms (PyTorch default init: weight=1, bias=0)
        "ln1_w": jnp.ones((1, d_model), jnp.float32),
        "ln1_b": jnp.zeros((1, d_model), jnp.float32),
        "ln2_w": jnp.ones((1, d_model), jnp.float32),
        "ln2_b": jnp.zeros((1, d_model), jnp.float32),
        "ln3_w": jnp.ones((1, d_model), jnp.float32),
        "ln3_b": jnp.zeros((1, d_model), jnp.float32),
    }


# ---------------------------- pure-JAX reference -----------------------------
def _ref_forward(tgt, memory, params, pos, query_pos, d_model=D_MODEL, nhead=NHEAD):
    hd = d_model // nhead

    def ln(x, w, b):
        mu = jnp.mean(x, -1, keepdims=True)
        var = jnp.mean(jnp.square(x - mu), -1, keepdims=True)
        return (x - mu) / jnp.sqrt(var + EPS) * w + b

    def mha(q_in, k_in, v_in, iw, ib, ow, ob):
        q = q_in @ iw[0:d_model].T + ib[0, 0:d_model]
        k = k_in @ iw[d_model:2 * d_model].T + ib[0, d_model:2 * d_model]
        v = v_in @ iw[2 * d_model:].T + ib[0, 2 * d_model:]
        Lq, Lk = q.shape[0], k.shape[0]
        qh = q.reshape(Lq, nhead, hd).transpose(1, 0, 2) / math.sqrt(hd)
        kh = k.reshape(Lk, nhead, hd).transpose(1, 0, 2)
        vh = v.reshape(Lk, nhead, hd).transpose(1, 0, 2)
        a = jax.nn.softmax(jnp.einsum("hqd,hkd->hqk", qh, kh), axis=-1)
        o = jnp.einsum("hqk,hkd->hqd", a, vh).transpose(1, 0, 2).reshape(Lq, d_model)
        return o @ ow.T + ob[0], jnp.mean(a, axis=0)

    def one_batch(t, m, qp, p):
        qk = t + qp
        sa, _ = mha(qk, qk, t, params["sa_in_w"], params["sa_in_b"],
                    params["sa_out_w"], params["sa_out_b"])
        x = ln(t + sa, params["ln1_w"][0], params["ln1_b"][0])
        ca, attn = mha(x + qp, m + p, m, params["ca_in_w"], params["ca_in_b"],
                       params["ca_out_w"], params["ca_out_b"])
        x = ln(x + ca, params["ln2_w"][0], params["ln2_b"][0])
        ff = jnp.maximum(x @ params["w1"].T + params["b1"][0], 0.0) @ params["w2"].T + params["b2"][0]
        x = ln(x + ff, params["ln3_w"][0], params["ln3_b"][0])
        return x, attn

    out_b, attn = jax.vmap(one_batch)(
        jnp.transpose(tgt, (1, 0, 2)), jnp.transpose(memory, (1, 0, 2)),
        jnp.transpose(query_pos, (1, 0, 2)), jnp.transpose(pos, (1, 0, 2)))
    return jnp.transpose(out_b, (1, 0, 2)), attn


# --------------------------------- main --------------------------------------
if __name__ == "__main__":
    key = jax.random.PRNGKey(0)
    k_tgt, k_mem, k_pos, k_qpos, k_par = jax.random.split(key, 5)

    tgt = jax.random.normal(k_tgt, (L_TGT, BATCH, D_MODEL), jnp.float32)
    memory = jax.random.normal(k_mem, (S_MEM, BATCH, D_MODEL), jnp.float32)
    pos = jax.random.normal(k_pos, (S_MEM, BATCH, D_MODEL), jnp.float32)
    query_pos = jax.random.normal(k_qpos, (L_TGT, BATCH, D_MODEL), jnp.float32)
    params = make_params(k_par)

    fwd = jax.jit(transformer_decoder_layer)
    out, attn_maps = fwd(tgt, memory, params, pos, query_pos)
    out, attn_maps = jax.block_until_ready((out, attn_maps))

    ref_out, ref_attn = _ref_forward(tgt, memory, params, pos, query_pos)
    assert out.shape == (L_TGT, BATCH, D_MODEL)
    assert attn_maps.shape == (BATCH, L_TGT, S_MEM)
    # 1e-4 tolerance: the EUP approx-reciprocal + one Newton step agrees with
    # the exact divide to ~1e-6 relative in practice; everything else is f32.
    assert jnp.allclose(out, ref_out, atol=1e-4, rtol=1e-4)
    assert jnp.allclose(attn_maps, ref_attn, atol=1e-4, rtol=1e-4)

    print("KERNEL_OK")
</pallas_src>

<mosaic_0001>
module attributes {stable_mosaic.version = 11 : i64} {
  func.func @_decoder_layer_kernel(%arg0: memref<16x32xf32, #tpu.memory_space<vmem>>, %arg1: memref<16x32xf32, #tpu.memory_space<vmem>>, %arg2: memref<32x32xf32, #tpu.memory_space<vmem>>, %arg3: memref<32x32xf32, #tpu.memory_space<vmem>>, %arg4: memref<32x64xf32, #tpu.memory_space<vmem>>, %arg5: memref<1x64xf32, #tpu.memory_space<vmem>>, %arg6: memref<32x32xf32, #tpu.memory_space<vmem>>, %arg7: memref<1x32xf32, #tpu.memory_space<vmem>>, %arg8: memref<32x32xf32, #tpu.memory_space<vmem>>, %arg9: memref<1x32xf32, #tpu.memory_space<vmem>>, %arg10: memref<32x32xf32, #tpu.memory_space<vmem>>, %arg11: memref<1x32xf32, #tpu.memory_space<vmem>>, %arg12: memref<32x32xf32, #tpu.memory_space<vmem>>, %arg13: memref<1x32xf32, #tpu.memory_space<vmem>>, %arg14: memref<32x32xf32, #tpu.memory_space<vmem>>, %arg15: memref<1x32xf32, #tpu.memory_space<vmem>>, %arg16: memref<32x32xf32, #tpu.memory_space<vmem>>, %arg17: memref<1x32xf32, #tpu.memory_space<vmem>>, %arg18: memref<32x64xf32, #tpu.memory_space<vmem>>, %arg19: memref<1x64xf32, #tpu.memory_space<vmem>>, %arg20: memref<64x32xf32, #tpu.memory_space<vmem>>, %arg21: memref<1x32xf32, #tpu.memory_space<vmem>>, %arg22: memref<1x32xf32, #tpu.memory_space<vmem>>, %arg23: memref<1x32xf32, #tpu.memory_space<vmem>>, %arg24: memref<1x32xf32, #tpu.memory_space<vmem>>, %arg25: memref<1x32xf32, #tpu.memory_space<vmem>>, %arg26: memref<1x32xf32, #tpu.memory_space<vmem>>, %arg27: memref<1x32xf32, #tpu.memory_space<vmem>>, %arg28: memref<16x32xf32, #tpu.memory_space<vmem>>, %arg29: memref<2x8x16xf32, #tpu.memory_space<vmem>>, %arg30: memref<16x32xf32, #tpu.memory_space<vmem>>) attributes {dimension_semantics = [], scalar_prefetch = 0 : i64, scratch_operands = 1 : i64, tpu.core_type = #tpu.core_type<tc>} {
    %c0 = arith.constant 0 : index
    %c0_0 = arith.constant 0 : index
    %0 = vector.load %arg0[%c0, %c0_0] : memref<16x32xf32, #tpu.memory_space<vmem>>, vector<16x32xf32>
    %c0_1 = arith.constant 0 : index
    %c0_2 = arith.constant 0 : index
    %1 = vector.load %arg1[%c0_1, %c0_2] : memref<16x32xf32, #tpu.memory_space<vmem>>, vector<16x32xf32>
    %c0_3 = arith.constant 0 : index
    %c0_4 = arith.constant 0 : index
    %2 = vector.load %arg2[%c0_3, %c0_4] : memref<32x32xf32, #tpu.memory_space<vmem>>, vector<32x32xf32>
    %c0_5 = arith.constant 0 : index
    %c0_6 = arith.constant 0 : index
    %3 = vector.load %arg3[%c0_5, %c0_6] : memref<32x32xf32, #tpu.memory_space<vmem>>, vector<32x32xf32>
    %4 = arith.addf %0, %1 : vector<16x32xf32>
    %c0_7 = arith.constant 0 : index
    %c0_8 = arith.constant 0 : index
    %5 = vector.load %arg4[%c0_7, %c0_8] : memref<32x64xf32, #tpu.memory_space<vmem>>, vector<32x64xf32>
    %cst = arith.constant dense<0.000000e+00> : vector<16x64xf32>
    %6 = tpu.matmul %4, %5, %cst {dimension_numbers = #tpu.dot_dimension_numbers<[1], [0], [0], [1], [0, 0, 1, 1], [], []>} : vector<16x32xf32>, vector<32x64xf32>, vector<16x64xf32> -> vector<16x64xf32>
    %c0_9 = arith.constant 0 : index
    %c0_10 = arith.constant 0 : index
    %7 = vector.load %arg5[%c0_9, %c0_10] : memref<1x64xf32, #tpu.memory_space<vmem>>, vector<1x64xf32>
    %8 = vector.broadcast %7 : vector<1x64xf32> to vector<16x64xf32>
    %9 = arith.addf %6, %8 : vector<16x64xf32>
    %c0_11 = arith.constant 0 : index
    %c0_12 = arith.constant 0 : index
    %10 = vector.load %arg6[%c0_11, %c0_12] : memref<32x32xf32, #tpu.memory_space<vmem>>, vector<32x32xf32>
    %cst_13 = arith.constant dense<0.000000e+00> : vector<16x32xf32>
    %11 = tpu.matmul %0, %10, %cst_13 {dimension_numbers = #tpu.dot_dimension_numbers<[1], [0], [0], [1], [0, 0, 1, 1], [], []>} : vector<16x32xf32>, vector<32x32xf32>, vector<16x32xf32> -> vector<16x32xf32>
    %c0_14 = arith.constant 0 : index
    %c0_15 = arith.constant 0 : index
    %12 = vector.load %arg7[%c0_14, %c0_15] : memref<1x32xf32, #tpu.memory_space<vmem>>, vector<1x32xf32>
    %13 = vector.broadcast %12 : vector<1x32xf32> to vector<16x32xf32>
    %14 = arith.addf %11, %13 : vector<16x32xf32>
    %15 = vector.extract_strided_slice %9 {offsets = [0, 0], sizes = [16, 32], strides = [1, 1]} : vector<16x64xf32> to vector<16x32xf32>
    %16 = vector.extract_strided_slice %9 {offsets = [0, 32], sizes = [16, 32], strides = [1, 1]} : vector<16x64xf32> to vector<16x32xf32>
    %c0_16 = arith.constant 0 : index
    %c0_17 = arith.constant 0 : index
    %17 = vector.load %arg8[%c0_16, %c0_17] : memref<32x32xf32, #tpu.memory_space<vmem>>, vector<32x32xf32>
    %c0_18 = arith.constant 0 : index
    %c0_19 = arith.constant 0 : index
    %18 = vector.load %arg9[%c0_18, %c0_19] : memref<1x32xf32, #tpu.memory_space<vmem>>, vector<1x32xf32>
    %19 = vector.shape_cast %15 : vector<16x32xf32> to vector<2x8x32xf32>
    %20 = vector.extract_strided_slice %19 {offsets = [0, 0, 0], sizes = [2, 8, 8], strides = [1, 1, 1]} : vector<2x8x32xf32> to vector<2x8x8xf32>
    %21 = vector.extract_strided_slice %19 {offsets = [0, 0, 8], sizes = [2, 8, 8], strides = [1, 1, 1]} : vector<2x8x32xf32> to vector<2x8x8xf32>
    %22 = vector.extract_strided_slice %19 {offsets = [0, 0, 16], sizes = [2, 8, 8], strides = [1, 1, 1]} : vector<2x8x32xf32> to vector<2x8x8xf32>
    %23 = vector.extract_strided_slice %19 {offsets = [0, 0, 24], sizes = [2, 8, 8], strides = [1, 1, 1]} : vector<2x8x32xf32> to vector<2x8x8xf32>
    %24 = tpu.concatenate %20, %21, %22, %23 in 0 : vector<2x8x8xf32>, vector<2x8x8xf32>, vector<2x8x8xf32>, vector<2x8x8xf32> -> vector<8x8x8xf32>
    %25 = vector.shape_cast %16 : vector<16x32xf32> to vector<2x8x32xf32>
    %26 = vector.extract_strided_slice %25 {offsets = [0, 0, 0], sizes = [2, 8, 8], strides = [1, 1, 1]} : vector<2x8x32xf32> to vector<2x8x8xf32>
    %27 = vector.extract_strided_slice %25 {offsets = [0, 0, 8], sizes = [2, 8, 8], strides = [1, 1, 1]} : vector<2x8x32xf32> to vector<2x8x8xf32>
    %28 = vector.extract_strided_slice %25 {offsets = [0, 0, 16], sizes = [2, 8, 8], strides = [1, 1, 1]} : vector<2x8x32xf32> to vector<2x8x8xf32>
    %29 = vector.extract_strided_slice %25 {offsets = [0, 0, 24], sizes = [2, 8, 8], strides = [1, 1, 1]} : vector<2x8x32xf32> to vector<2x8x8xf32>
    %30 = tpu.concatenate %26, %27, %28, %29 in 0 : vector<2x8x8xf32>, vector<2x8x8xf32>, vector<2x8x8xf32>, vector<2x8x8xf32> -> vector<8x8x8xf32>
    %31 = vector.shape_cast %14 : vector<16x32xf32> to vector<2x8x32xf32>
    %32 = vector.extract_strided_slice %31 {offsets = [0, 0, 0], sizes = [2, 8, 8], strides = [1, 1, 1]} : vector<2x8x32xf32> to vector<2x8x8xf32>
    %33 = vector.extract_strided_slice %31 {offsets = [0, 0, 8], sizes = [2, 8, 8], strides = [1, 1, 1]} : vector<2x8x32xf32> to vector<2x8x8xf32>
    %34 = vector.extract_strided_slice %31 {offsets = [0, 0, 16], sizes = [2, 8, 8], strides = [1, 1, 1]} : vector<2x8x32xf32> to vector<2x8x8xf32>
    %35 = vector.extract_strided_slice %31 {offsets = [0, 0, 24], sizes = [2, 8, 8], strides = [1, 1, 1]} : vector<2x8x32xf32> to vector<2x8x8xf32>
    %36 = tpu.concatenate %32, %33, %34, %35 in 0 : vector<2x8x8xf32>, vector<2x8x8xf32>, vector<2x8x8xf32>, vector<2x8x8xf32> -> vector<8x8x8xf32>
    "tpu.trace_start"() <{level = 10 : i32, message = "bqd,bkd->bqk"}> : () -> ()
    %cst_20 = arith.constant dense<0.000000e+00> : vector<8x8x8xf32>
    %37 = tpu.matmul %24, %30, %cst_20 {dimension_numbers = #tpu.dot_dimension_numbers<[2], [2], [1], [1], [0, 0, 0, 1, 1, 1], [0], [0]>} : vector<8x8x8xf32>, vector<8x8x8xf32>, vector<8x8x8xf32> -> vector<8x8x8xf32>
    "tpu.trace_stop"() : () -> ()
    %cst_21 = arith.constant dense<0xFF800000> : vector<8x8xf32>
    %38 = vector.multi_reduction <maximumf>, %37, %cst_21 [2] : vector<8x8x8xf32> to vector<8x8xf32>
    %39 = vector.shape_cast %38 : vector<8x8xf32> to vector<8x8x1xf32>
    %40 = vector.broadcast %39 : vector<8x8x1xf32> to vector<8x8x8xf32>
    %41 = arith.subf %37, %40 : vector<8x8x8xf32>
    %42 = math.exp %41 : vector<8x8x8xf32>
    %cst_22 = arith.constant dense<0.000000e+00> : vector<8x8xf32>
    %43 = vector.multi_reduction <add>, %42, %cst_22 [2] : vector<8x8x8xf32> to vector<8x8xf32>
    %44 = vector.shape_cast %43 : vector<8x8xf32> to vector<8x8x1xf32>
    %45 = tpu.reciprocal %44 {approx = true} : vector<8x8x1xf32> -> vector<8x8x1xf32>
    %46 = arith.mulf %44, %45 : vector<8x8x1xf32>
    %cst_23 = arith.constant 2.000000e+00 : f32
    %47 = vector.broadcast %cst_23 : f32 to vector<8x8x1xf32>
    %48 = arith.subf %47, %46 : vector<8x8x1xf32>
    %49 = arith.mulf %45, %48 : vector<8x8x1xf32>
    %50 = vector.broadcast %49 : vector<8x8x1xf32> to vector<8x8x8xf32>
    %51 = arith.mulf %42, %50 : vector<8x8x8xf32>
    "tpu.trace_start"() <{level = 10 : i32, message = "bqk,bkd->bqd"}> : () -> ()
    %cst_24 = arith.constant dense<0.000000e+00> : vector<8x8x8xf32>
    %52 = tpu.matmul %51, %36, %cst_24 {dimension_numbers = #tpu.dot_dimension_numbers<[2], [1], [1], [2], [0, 0, 0, 1, 1, 2], [0], [0]>} : vector<8x8x8xf32>, vector<8x8x8xf32>, vector<8x8x8xf32> -> vector<8x8x8xf32>
    "tpu.trace_stop"() : () -> ()
    %53 = vector.extract_strided_slice %52 {offsets = [0, 0, 0], sizes = [2, 8, 8], strides = [1, 1, 1]} : vector<8x8x8xf32> to vector<2x8x8xf32>
    %54 = vector.shape_cast %53 : vector<2x8x8xf32> to vector<16x8xf32>
    %c0_25 = arith.constant 0 : index
    %c0_26 = arith.constant 0 : index
    %55 = vector.load %arg30[%c0_25, %c0_26] : memref<16x32xf32, #tpu.memory_space<vmem>>, vector<16x8xf32>
    tpu.vector_store %arg30[%c0_25, %c0_26], %54 {strides = array<i32>} : memref<16x32xf32, #tpu.memory_space<vmem>>, vector<16x8xf32>,
    %56 = vector.extract_strided_slice %52 {offsets = [2, 0, 0], sizes = [2, 8, 8], strides = [1, 1, 1]} : vector<8x8x8xf32> to vector<2x8x8xf32>
    %57 = vector.shape_cast %56 : vector<2x8x8xf32> to vector<16x8xf32>
    %c0_27 = arith.constant 0 : index
    %c8 = arith.constant 8 : index
    %58 = vector.load %arg30[%c0_27, %c8] : memref<16x32xf32, #tpu.memory_space<vmem>>, vector<16x8xf32>
    tpu.vector_store %arg30[%c0_27, %c8], %57 {strides = array<i32>} : memref<16x32xf32, #tpu.memory_space<vmem>>, vector<16x8xf32>,
    %59 = vector.extract_strided_slice %52 {offsets = [4, 0, 0], sizes = [2, 8, 8], strides = [1, 1, 1]} : vector<8x8x8xf32> to vector<2x8x8xf32>
    %60 = vector.shape_cast %59 : vector<2x8x8xf32> to vector<16x8xf32>
    %c0_28 = arith.constant 0 : index
    %c16 = arith.constant 16 : index
    %61 = vector.load %arg30[%c0_28, %c16] : memref<16x32xf32, #tpu.memory_space<vmem>>, vector<16x8xf32>
    tpu.vector_store %arg30[%c0_28, %c16], %60 {strides = array<i32>} : memref<16x32xf32, #tpu.memory_space<vmem>>, vector<16x8xf32>,
    %62 = vector.extract_strided_slice %52 {offsets = [6, 0, 0], sizes = [2, 8, 8], strides = [1, 1, 1]} : vector<8x8x8xf32> to vector<2x8x8xf32>
    %63 = vector.shape_cast %62 : vector<2x8x8xf32> to vector<16x8xf32>
    %c0_29 = arith.constant 0 : index
    %c24 = arith.constant 24 : index
    %64 = vector.load %arg30[%c0_29, %c24] : memref<16x32xf32, #tpu.memory_space<vmem>>, vector<16x8xf32>
    tpu.vector_store %arg30[%c0_29, %c24], %63 {strides = array<i32>} : memref<16x32xf32, #tpu.memory_space<vmem>>, vector<16x8xf32>,
    %c0_30 = arith.constant 0 : index
    %c0_31 = arith.constant 0 : index
    %65 = vector.load %arg30[%c0_30, %c0_31] : memref<16x32xf32, #tpu.memory_space<vmem>>, vector<16x32xf32>
    %cst_32 = arith.constant dense<0.000000e+00> : vector<16x32xf32>
    %66 = tpu.matmul %65, %17, %cst_32 {dimension_numbers = #tpu.dot_dimension_numbers<[1], [0], [0], [1], [0, 0, 1, 1], [], []>} : vector<16x32xf32>, vector<32x32xf32>, vector<16x32xf32> -> vector<16x32xf32>
    %67 = vector.broadcast %18 : vector<1x32xf32> to vector<16x32xf32>
    %68 = arith.addf %66, %67 : vector<16x32xf32>
    %69 = arith.addf %0, %68 : vector<16x32xf32>
    %c0_33 = arith.constant 0 : index
    %c0_34 = arith.constant 0 : index
    %70 = vector.load %arg22[%c0_33, %c0_34] : memref<1x32xf32, #tpu.memory_space<vmem>>, vector<1x32xf32>
    %c0_35 = arith.constant 0 : index
    %c0_36 = arith.constant 0 : index
    %71 = vector.load %arg23[%c0_35, %c0_36] : memref<1x32xf32, #tpu.memory_space<vmem>>, vector<1x32xf32>
    %cst_37 = arith.constant dense<0.000000e+00> : vector<16xf32>
    %72 = vector.multi_reduction <add>, %69, %cst_37 [1] : vector<16x32xf32> to vector<16xf32>
    %73 = vector.shape_cast %72 : vector<16xf32> to vector<16x1xf32>
    %cst_38 = arith.constant 3.200000e+01 : f32
    %74 = vector.broadcast %cst_38 : f32 to vector<16x1xf32>
    %75 = arith.divf %73, %74 : vector<16x1xf32>
    %76 = vector.broadcast %75 : vector<16x1xf32> to vector<16x32xf32>
    %77 = arith.subf %69, %76 : vector<16x32xf32>
    %78 = arith.mulf %77, %77 : vector<16x32xf32>
    %cst_39 = arith.constant dense<0.000000e+00> : vector<16xf32>
    %79 = vector.multi_reduction <add>, %78, %cst_39 [1] : vector<16x32xf32> to vector<16xf32>
    %80 = vector.shape_cast %79 : vector<16xf32> to vector<16x1xf32>
    %cst_40 = arith.constant 3.200000e+01 : f32
    %81 = vector.broadcast %cst_40 : f32 to vector<16x1xf32>
    %82 = arith.divf %80, %81 : vector<16x1xf32>
    %cst_41 = arith.constant 9.99999974E-6 : f32
    %83 = vector.broadcast %cst_41 : f32 to vector<16x1xf32>
    %84 = arith.addf %82, %83 : vector<16x1xf32>
    %85 = math.rsqrt %84 : vector<16x1xf32>
    %86 = vector.broadcast %85 : vector<16x1xf32> to vector<16x32xf32>
    %87 = arith.mulf %77, %86 : vector<16x32xf32>
    %88 = vector.broadcast %70 : vector<1x32xf32> to vector<16x32xf32>
    %89 = arith.mulf %87, %88 : vector<16x32xf32>
    %90 = vector.broadcast %71 : vector<1x32xf32> to vector<16x32xf32>
    %91 = arith.addf %89, %90 : vector<16x32xf32>
    %92 = arith.addf %91, %1 : vector<16x32xf32>
    %c0_42 = arith.constant 0 : index
    %c0_43 = arith.constant 0 : index
    %93 = vector.load %arg10[%c0_42, %c0_43] : memref<32x32xf32, #tpu.memory_space<vmem>>, vector<32x32xf32>
    %cst_44 = arith.constant dense<0.000000e+00> : vector<16x32xf32>
    %94 = tpu.matmul %92, %93, %cst_44 {dimension_numbers = #tpu.dot_dimension_numbers<[1], [0], [0], [1], [0, 0, 1, 1], [], []>} : vector<16x32xf32>, vector<32x32xf32>, vector<16x32xf32> -> vector<16x32xf32>
    %c0_45 = arith.constant 0 : index
    %c0_46 = arith.constant 0 : index
    %95 = vector.load %arg11[%c0_45, %c0_46] : memref<1x32xf32, #tpu.memory_space<vmem>>, vector<1x32xf32>
    %96 = vector.broadcast %95 : vector<1x32xf32> to vector<16x32xf32>
    %97 = arith.addf %94, %96 : vector<16x32xf32>
    %98 = arith.addf %2, %3 : vector<32x32xf32>
    %c0_47 = arith.constant 0 : index
    %c0_48 = arith.constant 0 : index
    %99 = vector.load %arg12[%c0_47, %c0_48] : memref<32x32xf32, #tpu.memory_space<vmem>>, vector<32x32xf32>
    %cst_49 = arith.constant dense<0.000000e+00> : vector<32x32xf32>
    %100 = tpu.matmul %98, %99, %cst_49 {dimension_numbers = #tpu.dot_dimension_numbers<[1], [0], [0], [1], [0, 0, 1, 1], [], []>} : vector<32x32xf32>, vector<32x32xf32>, vector<32x32xf32> -> vector<32x32xf32>
    %c0_50 = arith.constant 0 : index
    %c0_51 = arith.constant 0 : index
    %101 = vector.load %arg13[%c0_50, %c0_51] : memref<1x32xf32, #tpu.memory_space<vmem>>, vector<1x32xf32>
    %102 = vector.broadcast %101 : vector<1x32xf32> to vector<32x32xf32>
    %103 = arith.addf %100, %102 : vector<32x32xf32>
    %c0_52 = arith.constant 0 : index
    %c0_53 = arith.constant 0 : index
    %104 = vector.load %arg14[%c0_52, %c0_53] : memref<32x32xf32, #tpu.memory_space<vmem>>, vector<32x32xf32>
    %cst_54 = arith.constant dense<0.000000e+00> : vector<32x32xf32>
    %105 = tpu.matmul %2, %104, %cst_54 {dimension_numbers = #tpu.dot_dimension_numbers<[1], [0], [0], [1], [0, 0, 1, 1], [], []>} : vector<32x32xf32>, vector<32x32xf32>, vector<32x32xf32> -> vector<32x32xf32>
    %c0_55 = arith.constant 0 : index
    %c0_56 = arith.constant 0 : index
    %106 = vector.load %arg15[%c0_55, %c0_56] : memref<1x32xf32, #tpu.memory_space<vmem>>, vector<1x32xf32>
    %107 = vector.broadcast %106 : vector<1x32xf32> to vector<32x32xf32>
    %108 = arith.addf %105, %107 : vector<32x32xf32>
    %c0_57 = arith.constant 0 : index
    %c0_58 = arith.constant 0 : index
    %109 = vector.load %arg16[%c0_57, %c0_58] : memref<32x32xf32, #tpu.memory_space<vmem>>, vector<32x32xf32>
    %c0_59 = arith.constant 0 : index
    %c0_60 = arith.constant 0 : index
    %110 = vector.load %arg17[%c0_59, %c0_60] : memref<1x32xf32, #tpu.memory_space<vmem>>, vector<1x32xf32>
    %111 = vector.shape_cast %97 : vector<16x32xf32> to vector<2x8x32xf32>
    %112 = vector.extract_strided_slice %111 {offsets = [0, 0, 0], sizes = [2, 8, 8], strides = [1, 1, 1]} : vector<2x8x32xf32> to vector<2x8x8xf32>
    %113 = vector.extract_strided_slice %111 {offsets = [0, 0, 8], sizes = [2, 8, 8], strides = [1, 1, 1]} : vector<2x8x32xf32> to vector<2x8x8xf32>
    %114 = vector.extract_strided_slice %111 {offsets = [0, 0, 16], sizes = [2, 8, 8], strides = [1, 1, 1]} : vector<2x8x32xf32> to vector<2x8x8xf32>
    %115 = vector.extract_strided_slice %111 {offsets = [0, 0, 24], sizes = [2, 8, 8], strides = [1, 1, 1]} : vector<2x8x32xf32> to vector<2x8x8xf32>
    %116 = tpu.concatenate %112, %113, %114, %115 in 0 : vector<2x8x8xf32>, vector<2x8x8xf32>, vector<2x8x8xf32>, vector<2x8x8xf32> -> vector<8x8x8xf32>
    %117 = vector.shape_cast %103 : vector<32x32xf32> to vector<2x16x32xf32>
    %118 = vector.extract_strided_slice %117 {offsets = [0, 0, 0], sizes = [2, 16, 8], strides = [1, 1, 1]} : vector<2x16x32xf32> to vector<2x16x8xf32>
    %119 = vector.extract_strided_slice %117 {offsets = [0, 0, 8], sizes = [2, 16, 8], strides = [1, 1, 1]} : vector<2x16x32xf32> to vector<2x16x8xf32>
    %120 = vector.extract_strided_slice %117 {offsets = [0, 0, 16], sizes = [2, 16, 8], strides = [1, 1, 1]} : vector<2x16x32xf32> to vector<2x16x8xf32>
    %121 = vector.extract_strided_slice %117 {offsets = [0, 0, 24], sizes = [2, 16, 8], strides = [1, 1, 1]} : vector<2x16x32xf32> to vector<2x16x8xf32>
    %122 = tpu.concatenate %118, %119, %120, %121 in 0 : vector<2x16x8xf32>, vector<2x16x8xf32>, vector<2x16x8xf32>, vector<2x16x8xf32> -> vector<8x16x8xf32>
    %123 = vector.shape_cast %108 : vector<32x32xf32> to vector<2x16x32xf32>
    %124 = vector.extract_strided_slice %123 {offsets = [0, 0, 0], sizes = [2, 16, 8], strides = [1, 1, 1]} : vector<2x16x32xf32> to vector<2x16x8xf32>
    %125 = vector.extract_strided_slice %123 {offsets = [0, 0, 8], sizes = [2, 16, 8], strides = [1, 1, 1]} : vector<2x16x32xf32> to vector<2x16x8xf32>
    %126 = vector.extract_strided_slice %123 {offsets = [0, 0, 16], sizes = [2, 16, 8], strides = [1, 1, 1]} : vector<2x16x32xf32> to vector<2x16x8xf32>
    %127 = vector.extract_strided_slice %123 {offsets = [0, 0, 24], sizes = [2, 16, 8], strides = [1, 1, 1]} : vector<2x16x32xf32> to vector<2x16x8xf32>
    %128 = tpu.concatenate %124, %125, %126, %127 in 0 : vector<2x16x8xf32>, vector<2x16x8xf32>, vector<2x16x8xf32>, vector<2x16x8xf32> -> vector<8x16x8xf32>
    "tpu.trace_start"() <{level = 10 : i32, message = "bqd,bkd->bqk"}> : () -> ()
    %cst_61 = arith.constant dense<0.000000e+00> : vector<8x8x16xf32>
    %129 = tpu.matmul %116, %122, %cst_61 {dimension_numbers = #tpu.dot_dimension_numbers<[2], [2], [1], [1], [0, 0, 0, 1, 1, 1], [0], [0]>} : vector<8x8x8xf32>, vector<8x16x8xf32>, vector<8x8x16xf32> -> vector<8x8x16xf32>
    "tpu.trace_stop"() : () -> ()
    %cst_62 = arith.constant dense<0xFF800000> : vector<8x8xf32>
    %130 = vector.multi_reduction <maximumf>, %129, %cst_62 [2] : vector<8x8x16xf32> to vector<8x8xf32>
    %131 = vector.shape_cast %130 : vector<8x8xf32> to vector<8x8x1xf32>
    %132 = vector.broadcast %131 : vector<8x8x1xf32> to vector<8x8x16xf32>
    %133 = arith.subf %129, %132 : vector<8x8x16xf32>
    %134 = math.exp %133 : vector<8x8x16xf32>
    %cst_63 = arith.constant dense<0.000000e+00> : vector<8x8xf32>
    %135 = vector.multi_reduction <add>, %134, %cst_63 [2] : vector<8x8x16xf32> to vector<8x8xf32>
    %136 = vector.shape_cast %135 : vector<8x8xf32> to vector<8x8x1xf32>
    %137 = tpu.reciprocal %136 {approx = true} : vector<8x8x1xf32> -> vector<8x8x1xf32>
    %138 = arith.mulf %136, %137 : vector<8x8x1xf32>
    %cst_64 = arith.constant 2.000000e+00 : f32
    %139 = vector.broadcast %cst_64 : f32 to vector<8x8x1xf32>
    %140 = arith.subf %139, %138 : vector<8x8x1xf32>
    %141 = arith.mulf %137, %140 : vector<8x8x1xf32>
    %142 = vector.broadcast %141 : vector<8x8x1xf32> to vector<8x8x16xf32>
    %143 = arith.mulf %134, %142 : vector<8x8x16xf32>
    "tpu.trace_start"() <{level = 10 : i32, message = "bqk,bkd->bqd"}> : () -> ()
    %cst_65 = arith.constant dense<0.000000e+00> : vector<8x8x8xf32>
    %144 = tpu.matmul %143, %128, %cst_65 {dimension_numbers = #tpu.dot_dimension_numbers<[2], [1], [1], [2], [0, 0, 0, 1, 1, 2], [0], [0]>} : vector<8x8x16xf32>, vector<8x16x8xf32>, vector<8x8x8xf32> -> vector<8x8x8xf32>
    "tpu.trace_stop"() : () -> ()
    %145 = vector.extract_strided_slice %144 {offsets = [0, 0, 0], sizes = [2, 8, 8], strides = [1, 1, 1]} : vector<8x8x8xf32> to vector<2x8x8xf32>
    %146 = vector.shape_cast %145 : vector<2x8x8xf32> to vector<16x8xf32>
    %c0_66 = arith.constant 0 : index
    %c0_67 = arith.constant 0 : index
    %147 = vector.load %arg30[%c0_66, %c0_67] : memref<16x32xf32, #tpu.memory_space<vmem>>, vector<16x8xf32>
    tpu.vector_store %arg30[%c0_66, %c0_67], %146 {strides = array<i32>} : memref<16x32xf32, #tpu.memory_space<vmem>>, vector<16x8xf32>,
    %148 = vector.extract_strided_slice %144 {offsets = [2, 0, 0], sizes = [2, 8, 8], strides = [1, 1, 1]} : vector<8x8x8xf32> to vector<2x8x8xf32>
    %149 = vector.shape_cast %148 : vector<2x8x8xf32> to vector<16x8xf32>
    %c0_68 = arith.constant 0 : index
    %c8_69 = arith.constant 8 : index
    %150 = vector.load %arg30[%c0_68, %c8_69] : memref<16x32xf32, #tpu.memory_space<vmem>>, vector<16x8xf32>
    tpu.vector_store %arg30[%c0_68, %c8_69], %149 {strides = array<i32>} : memref<16x32xf32, #tpu.memory_space<vmem>>, vector<16x8xf32>,
    %151 = vector.extract_strided_slice %144 {offsets = [4, 0, 0], sizes = [2, 8, 8], strides = [1, 1, 1]} : vector<8x8x8xf32> to vector<2x8x8xf32>
    %152 = vector.shape_cast %151 : vector<2x8x8xf32> to vector<16x8xf32>
    %c0_70 = arith.constant 0 : index
    %c16_71 = arith.constant 16 : index
    %153 = vector.load %arg30[%c0_70, %c16_71] : memref<16x32xf32, #tpu.memory_space<vmem>>, vector<16x8xf32>
    tpu.vector_store %arg30[%c0_70, %c16_71], %152 {strides = array<i32>} : memref<16x32xf32, #tpu.memory_space<vmem>>, vector<16x8xf32>,
    %154 = vector.extract_strided_slice %144 {offsets = [6, 0, 0], sizes = [2, 8, 8], strides = [1, 1, 1]} : vector<8x8x8xf32> to vector<2x8x8xf32>
    %155 = vector.shape_cast %154 : vector<2x8x8xf32> to vector<16x8xf32>
    %c0_72 = arith.constant 0 : index
    %c24_73 = arith.constant 24 : index
    %156 = vector.load %arg30[%c0_72, %c24_73] : memref<16x32xf32, #tpu.memory_space<vmem>>, vector<16x8xf32>
    tpu.vector_store %arg30[%c0_72, %c24_73], %155 {strides = array<i32>} : memref<16x32xf32, #tpu.memory_space<vmem>>, vector<16x8xf32>,
    %c0_74 = arith.constant 0 : index
    %c0_75 = arith.constant 0 : index
    %157 = vector.load %arg30[%c0_74, %c0_75] : memref<16x32xf32, #tpu.memory_space<vmem>>, vector<16x32xf32>
    %cst_76 = arith.constant dense<0.000000e+00> : vector<16x32xf32>
    %158 = tpu.matmul %157, %109, %cst_76 {dimension_numbers = #tpu.dot_dimension_numbers<[1], [0], [0], [1], [0, 0, 1, 1], [], []>} : vector<16x32xf32>, vector<32x32xf32>, vector<16x32xf32> -> vector<16x32xf32>
    %159 = vector.broadcast %110 : vector<1x32xf32> to vector<16x32xf32>
    %160 = arith.addf %158, %159 : vector<16x32xf32>
    %161 = vector.extract_strided_slice %143 {offsets = [0, 0, 0], sizes = [2, 8, 16], strides = [1, 1, 1]} : vector<8x8x16xf32> to vector<2x8x16xf32>
    %162 = vector.extract_strided_slice %143 {offsets = [2, 0, 0], sizes = [2, 8, 16], strides = [1, 1, 1]} : vector<8x8x16xf32> to vector<2x8x16xf32>
    %163 = arith.addf %161, %162 : vector<2x8x16xf32>
    %164 = vector.extract_strided_slice %143 {offsets = [4, 0, 0], sizes = [2, 8, 16], strides = [1, 1, 1]} : vector<8x8x16xf32> to vector<2x8x16xf32>
    %165 = arith.addf %163, %164 : vector<2x8x16xf32>
    %166 = vector.extract_strided_slice %143 {offsets = [6, 0, 0], sizes = [2, 8, 16], strides = [1, 1, 1]} : vector<8x8x16xf32> to vector<2x8x16xf32>
    %167 = arith.addf %165, %166 : vector<2x8x16xf32>
    %cst_77 = arith.constant 2.500000e-01 : f32
    %168 = vector.broadcast %cst_77 : f32 to vector<2x8x16xf32>
    %169 = arith.mulf %167, %168 : vector<2x8x16xf32>
    %170 = arith.addf %91, %160 : vector<16x32xf32>
    %c0_78 = arith.constant 0 : index
    %c0_79 = arith.constant 0 : index
    %171 = vector.load %arg24[%c0_78, %c0_79] : memref<1x32xf32, #tpu.memory_space<vmem>>, vector<1x32xf32>
    %c0_80 = arith.constant 0 : index
    %c0_81 = arith.constant 0 : index
    %172 = vector.load %arg25[%c0_80, %c0_81] : memref<1x32xf32, #tpu.memory_space<vmem>>, vector<1x32xf32>
    %cst_82 = arith.constant dense<0.000000e+00> : vector<16xf32>
    %173 = vector.multi_reduction <add>, %170, %cst_82 [1] : vector<16x32xf32> to vector<16xf32>
    %174 = vector.shape_cast %173 : vector<16xf32> to vector<16x1xf32>
    %cst_83 = arith.constant 3.200000e+01 : f32
    %175 = vector.broadcast %cst_83 : f32 to vector<16x1xf32>
    %176 = arith.divf %174, %175 : vector<16x1xf32>
    %177 = vector.broadcast %176 : vector<16x1xf32> to vector<16x32xf32>
    %178 = arith.subf %170, %177 : vector<16x32xf32>
    %179 = arith.mulf %178, %178 : vector<16x32xf32>
    %cst_84 = arith.constant dense<0.000000e+00> : vector<16xf32>
    %180 = vector.multi_reduction <add>, %179, %cst_84 [1] : vector<16x32xf32> to vector<16xf32>
    %181 = vector.shape_cast %180 : vector<16xf32> to vector<16x1xf32>
    %cst_85 = arith.constant 3.200000e+01 : f32
    %182 = vector.broadcast %cst_85 : f32 to vector<16x1xf32>
    %183 = arith.divf %181, %182 : vector<16x1xf32>
    %cst_86 = arith.constant 9.99999974E-6 : f32
    %184 = vector.broadcast %cst_86 : f32 to vector<16x1xf32>
    %185 = arith.addf %183, %184 : vector<16x1xf32>
    %186 = math.rsqrt %185 : vector<16x1xf32>
    %187 = vector.broadcast %186 : vector<16x1xf32> to vector<16x32xf32>
    %188 = arith.mulf %178, %187 : vector<16x32xf32>
    %189 = vector.broadcast %171 : vector<1x32xf32> to vector<16x32xf32>
    %190 = arith.mulf %188, %189 : vector<16x32xf32>
    %191 = vector.broadcast %172 : vector<1x32xf32> to vector<16x32xf32>
    %192 = arith.addf %190, %191 : vector<16x32xf32>
    %c0_87 = arith.constant 0 : index
    %c0_88 = arith.constant 0 : index
    %193 = vector.load %arg18[%c0_87, %c0_88] : memref<32x64xf32, #tpu.memory_space<vmem>>, vector<32x64xf32>
    %cst_89 = arith.constant dense<0.000000e+00> : vector<16x64xf32>
    %194 = tpu.matmul %192, %193, %cst_89 {dimension_numbers = #tpu.dot_dimension_numbers<[1], [0], [0], [1], [0, 0, 1, 1], [], []>} : vector<16x32xf32>, vector<32x64xf32>, vector<16x64xf32> -> vector<16x64xf32>
    %c0_90 = arith.constant 0 : index
    %c0_91 = arith.constant 0 : index
    %195 = vector.load %arg19[%c0_90, %c0_91] : memref<1x64xf32, #tpu.memory_space<vmem>>, vector<1x64xf32>
    %196 = vector.broadcast %195 : vector<1x64xf32> to vector<16x64xf32>
    %197 = arith.addf %194, %196 : vector<16x64xf32>
    %cst_92 = arith.constant 0.000000e+00 : f32
    %198 = vector.broadcast %cst_92 : f32 to vector<16x64xf32>
    %199 = arith.maximumf %197, %198 : vector<16x64xf32>
    %c0_93 = arith.constant 0 : index
    %c0_94 = arith.constant 0 : index
    %200 = vector.load %arg20[%c0_93, %c0_94] : memref<64x32xf32, #tpu.memory_space<vmem>>, vector<64x32xf32>
    %cst_95 = arith.constant dense<0.000000e+00> : vector<16x32xf32>
    %201 = tpu.matmul %199, %200, %cst_95 {dimension_numbers = #tpu.dot_dimension_numbers<[1], [0], [0], [1], [0, 0, 1, 1], [], []>} : vector<16x64xf32>, vector<64x32xf32>, vector<16x32xf32> -> vector<16x32xf32>
    %c0_96 = arith.constant 0 : index
    %c0_97 = arith.constant 0 : index
    %202 = vector.load %arg21[%c0_96, %c0_97] : memref<1x32xf32, #tpu.memory_space<vmem>>, vector<1x32xf32>
    %203 = vector.broadcast %202 : vector<1x32xf32> to vector<16x32xf32>
    %204 = arith.addf %201, %203 : vector<16x32xf32>
    %205 = arith.addf %192, %204 : vector<16x32xf32>
    %c0_98 = arith.constant 0 : index
    %c0_99 = arith.constant 0 : index
    %206 = vector.load %arg26[%c0_98, %c0_99] : memref<1x32xf32, #tpu.memory_space<vmem>>, vector<1x32xf32>
    %c0_100 = arith.constant 0 : index
    %c0_101 = arith.constant 0 : index
    %207 = vector.load %arg27[%c0_100, %c0_101] : memref<1x32xf32, #tpu.memory_space<vmem>>, vector<1x32xf32>
    %cst_102 = arith.constant dense<0.000000e+00> : vector<16xf32>
    %208 = vector.multi_reduction <add>, %205, %cst_102 [1] : vector<16x32xf32> to vector<16xf32>
    %209 = vector.shape_cast %208 : vector<16xf32> to vector<16x1xf32>
    %cst_103 = arith.constant 3.200000e+01 : f32
    %210 = vector.broadcast %cst_103 : f32 to vector<16x1xf32>
    %211 = arith.divf %209, %210 : vector<16x1xf32>
    %212 = vector.broadcast %211 : vector<16x1xf32> to vector<16x32xf32>
    %213 = arith.subf %205, %212 : vector<16x32xf32>
    %214 = arith.mulf %213, %213 : vector<16x32xf32>
    %cst_104 = arith.constant dense<0.000000e+00> : vector<16xf32>
    %215 = vector.multi_reduction <add>, %214, %cst_104 [1] : vector<16x32xf32> to vector<16xf32>
    %216 = vector.shape_cast %215 : vector<16xf32> to vector<16x1xf32>
    %cst_105 = arith.constant 3.200000e+01 : f32
    %217 = vector.broadcast %cst_105 : f32 to vector<16x1xf32>
    %218 = arith.divf %216, %217 : vector<16x1xf32>
    %cst_106 = arith.constant 9.99999974E-6 : f32
    %219 = vector.broadcast %cst_106 : f32 to vector<16x1xf32>
    %220 = arith.addf %218, %219 : vector<16x1xf32>
    %221 = math.rsqrt %220 : vector<16x1xf32>
    %222 = vector.broadcast %221 : vector<16x1xf32> to vector<16x32xf32>
    %223 = arith.mulf %213, %222 : vector<16x32xf32>
    %224 = vector.broadcast %206 : vector<1x32xf32> to vector<16x32xf32>
    %225 = arith.mulf %223, %224 : vector<16x32xf32>
    %226 = vector.broadcast %207 : vector<1x32xf32> to vector<16x32xf32>
    %227 = arith.addf %225, %226 : vector<16x32xf32>
    %c0_107 = arith.constant 0 : index
    %c0_108 = arith.constant 0 : index
    %228 = vector.load %arg28[%c0_107, %c0_108] : memref<16x32xf32, #tpu.memory_space<vmem>>, vector<16x32xf32>
    tpu.vector_store %arg28[%c0_107, %c0_108], %227 {strides = array<i32>} : memref<16x32xf32, #tpu.memory_space<vmem>>, vector<16x32xf32>,
    %c0_109 = arith.constant 0 : index
    %c0_110 = arith.constant 0 : index
    %c0_111 = arith.constant 0 : index
    %229 = vector.load %arg29[%c0_109, %c0_110, %c0_111] : memref<2x8x16xf32, #tpu.memory_space<vmem>>, vector<2x8x16xf32>
    tpu.vector_store %arg29[%c0_109, %c0_110, %c0_111], %169 {strides = array<i32>} : memref<2x8x16xf32, #tpu.memory_space<vmem>>, vector<2x8x16xf32>,
    return
  }
}

</mosaic_0001>

<bundles_post_ra>
// kernel: transformer_decoder_layer.1
= control target key start
LH: loop header
LB: loop body
LE: loop exit
PB: predicated region body
PF: predicated region fallthrough
CT: control target
= control target key end

     0   :  { %s4884_s6 = smov 1   ;;  %s4885_s10 = smov 2   ;;  %s5555_s0 = inlined_call_operand.smem [shape: u32[30], index: -1, kind: input, shape index: {}] }
   0x1   :  { %s4933_s5 = sld [smem:[%s5555_s0]]   ;;  %s4886_s14 = smov 3  }
   0x2   :  { %s4938_s9 = sld [smem:[%s5555_s0 + %s4884_s6]]   ;;  %s4887_s18 = smov 4  }
   0x3   :  { %s4943_s13 = sld [smem:[%s5555_s0 + %s4885_s10]]   ;;  %s4888_s22 = smov 5  }
   0x4   :  { %s4948_s17 = sld [smem:[%s5555_s0 + %s4886_s14]]   ;;  %s4889_s26 = smov 6  }
   0x5   :  { %s4953_s21 = sld [smem:[%s5555_s0 + %s4887_s18]]   ;;  %s4890_s30 = smov 7  }
   0x6   :  { %s4958_s25 = sld [smem:[%s5555_s0 + %s4888_s22]]   ;;  %s4891_s4 = smov 8  }
   0x7   :  { %s4963_s29 = sld [smem:[%s5555_s0 + %s4889_s26]]   ;;  %s4892_s10 = smov 9  }
   0x8   :  { %s4968_s3 = sld [smem:[%s5555_s0 + %s4890_s30]]   ;;  %s4893_s15 = smov 10  }
   0x9   :  { %s4973_s8 = sld [smem:[%s5555_s0 + %s4891_s4]]   ;;  %s4894_s20 = smov 11  }
   0xa   :  { %s4978_s14 = sld [smem:[%s5555_s0 + %s4892_s10]]   ;;  %s4895_s26 = smov 12  }
   0xb   :  { %s4983_s19 = sld [smem:[%s5555_s0 + %s4893_s15]]   ;;  %s4896_s1 = smov 13  }
   0xc   :  { %s4988_s24 = sld [smem:[%s5555_s0 + %s4894_s20]]   ;;  %s4897_s7 = smov 14  }
   0xd   :  { %s4993_s30 = sld [smem:[%s5555_s0 + %s4895_s26]]   ;;  %s4898_s15 = smov 15  }
   0xe   :  { %s4998_s6 = sld [smem:[%s5555_s0 + %s4896_s1]]   ;;  %s4899_s22 = smov 16  }
   0xf   :  { %s5003_s12 = sld [smem:[%s5555_s0 + %s4897_s7]]   ;;  %s4900_s28 = smov 17  }
  0x10   :  { %s5008_s20 = sld [smem:[%s5555_s0 + %s4898_s15]]   ;;  %s4901_s7 = smov 18  }
  0x11   :  { %s5013_s27 = sld [smem:[%s5555_s0 + %s4899_s22]]   ;;  %s4902_s15 = smov 19  }
  0x12   :  { %5559 = sst [smem:[#allocation6_spill]] %s4988_s24  ;;  %s4903_s22 = smov 20  }
  0x13   :  { %s5018_s4 = sld [smem:[%s5555_s0 + %s4900_s28]]   ;;  %s4904_s28 = smov 21  }
  0x14   :  { %5560 = sst [smem:[#allocation7_spill]] %s4998_s6 }
  0x15   :  { %s5023_s24 = sld [smem:[%s5555_s0 + %s4901_s7]]   ;;  %s4905_s7 = smov 22  }
  0x16   :  { %5561 = sst [smem:[#allocation8_spill]] %s5008_s20 }
  0x17   :  { %5562 = sst [smem:[#allocation9_spill]] %s5013_s27 }
  0x18   :  { %s5028_s20 = sld [smem:[%s5555_s0 + %s4902_s15]]   ;;  %s4906_s15 = smov 23  }
  0x19   :  { %5563 = sst [smem:[#allocation10_spill]] %s5018_s4 }
  0x1a   :  { %s5033_s27 = sld [smem:[%s5555_s0 + %s4903_s22]]   ;;  %s4907_s22 = smov 24  }
  0x1b   :  { %5564 = sst [smem:[#allocation11_spill]] %s5023_s24 }
  0x1c   :  { %s5038_s4 = sld [smem:[%s5555_s0 + %s4904_s28]]   ;;  %s4908_s28 = smov 25  }
  0x1d   :  { %s5043_s24 = sld [smem:[%s5555_s0 + %s4905_s7]]   ;;  %s4909_s7 = smov 26  }
  0x1e   :  { %5565 = sst [smem:[#allocation12_spill]] %s5028_s20 }
  0x1f   :  { %s5048_s20 = sld [smem:[%s5555_s0 + %s4906_s15]]   ;;  %s4910_s15 = smov 27  }
  0x20   :  { %5566 = sst [smem:[#allocation13_spill]] %s5033_s27 }
  0x21   :  { %s5053_s27 = sld [smem:[%s5555_s0 + %s4907_s22]]   ;;  %s4911_s22 = smov 28  }
  0x22   :  { %5567 = sst [smem:[#allocation14_spill]] %s5038_s4 }
  0x23   :  { %s5058_s4 = sld [smem:[%s5555_s0 + %s4908_s28]]   ;;  %s4912_s28 = smov 29  }
  0x24   :  { %s5063_s6 = sld [smem:[%s5555_s0 + %s4909_s7]]  }
  0x25   :  { %5568 = sst [smem:[#allocation15_spill]] %s5048_s20 }
  0x26   :  { %s5068_s20 = sld [smem:[%s5555_s0 + %s4910_s15]]  }
  0x27   :  { %5569 = sst [smem:[#allocation16_spill]] %s5053_s27 }
  0x28   :  { %s5073_s27 = sld [smem:[%s5555_s0 + %s4911_s22]]  }
  0x29   :  { %5570 = sst [smem:[#allocation17_spill]] %s5058_s4 }
  0x2a   :  { %s5078_s4 = sld [smem:[%s5555_s0 + %s4912_s28]]  }
  0x2b   :  { %v136_v0 = vld [vmem:[%s4953_s21] sm:$0xff]  ;;  %v137_v1 = vld [vmem:[%s4953_s21 + $0x8] sm:$0xff]  ;;  %v138_v2 = vld [vmem:[%s4953_s21 + $0x10] sm:$0xff]  ;;  %vm147_vm0 = vcmask 261120  }
  0x2c   :  { %v4547_v3 = vpack.c.bf16 %v137_v1, %v136_v0  ;;  %v139_v4 = vld [vmem:[%s4953_s21 + $0x18] sm:$0xff]  ;;  %v5085_v5 = vld [vmem:[%s4933_s5] sm:$0xff] }
  0x2d   :  { %v5088_v6 = vld [vmem:[%s4938_s9] sm:$0xff]  ;;  %v4551_v7 = vpack.c.bf16 %v139_v4, %v138_v2 }
  0x2e   :  { %v134_v8 = vadd.f32 %v5088_v6, %v5085_v5 }
  0x2f   :  { %65 = vsyncpa [#allocation4], 0  ;;  %4548 = vmatprep.subr.bf16.mxu1 %v4547_v3  ;;  %v5094_v9 = vld [vmem:[%s4933_s5 + $0x8] sm:$0xff]  ;;  %v229_v12 = vld [vmem:[%s4963_s29] sm:$0xff]  ;;  %v4913_v20 = vmov 0.0   ;;  %s4914_s0 = smov 112  }
  0x30   :  { %4550 = vmatpush3.bf16.msra.mxu1 %v4547_v3  ;;  %4250 = vmatprep.mubr.msk.f32.mxu1 %vm147_vm0, %v134_v8  ;;  %v5097_v10 = vld [vmem:[%s4938_s9 + $0x8] sm:$0xff]  ;;  %v231_v15 = vld [vmem:[%s4963_s29 + $0x10] sm:$0xff]  ;;  %v232_v16 = vld [vmem:[%s4963_s29 + $0x18] sm:$0xff]  ;;  %s4915_s5 = smov 120   ;;  %vm4916_vm1 = vmmov 0   ;;  %s4917_s9 = smov 104  }
  0x31   :  { %4552 = vmatprep.subr.bf16.mxu1 %v4551_v7  ;;  %v135_v11 = vadd.f32 %v5097_v10, %v5094_v9  ;;  %v230_v13 = vld [vmem:[%s4963_s29 + $0x8] sm:$0xff]  ;;  %v4559_v17 = vpack.c.bf16 %v232_v16, %v231_v15  ;;  %v4007_v18 = vld [vmem:[%s4958_s25] ss:$0 sm:$0xff]  ;;  %4264 = vmatprep.subr.mxu0 %v4913_v20  ;;  %s4918_s21 = smov 96   ;;  %vm362_vm2 = vcmask 64512   ;;  %s4919_s25 = smov 8  }
  0x32   :  { %v4555_v14 = vpack.c.bf16 %v230_v13, %v229_v12  ;;  %4266 = vmatprep.mubr.msk.f32.mxu0 %vm4916_vm1, %v4913_v20  ;;  %v4010_v37 = vld [vmem:[%s4968_s3] ss:$0 sm:$0xff]  ;;  %s4920_s29 = smov 16   ;;  %s4921_s3 = smov 24   ;;  %vm1675_vm3 = vcmask 130112   ;;  %vm1686_vm4 = vcmask 195712   ;;  %vm5335_vm6 = vmpackc.low %vm362_vm2, %vm362_vm2 }
  0x33   :  { %vm1697_vm5 = vcmask 261312   ;;  %vm2845_vm7 = vcmask 130048   ;;  %s5581_s7 = sld [smem:[#allocation16_spill]]  ;;  %s5582_s10 = sld [smem:[#allocation17_spill]]  ;;  %vm3826_vm8 = vcmask 523264  }
  0x34   :  { %4554 = vmatpush3.bf16.msra.mxu1 %v4551_v7  ;;  %s5583_s11 = sld [smem:[#allocation12_spill]]  ;;  %s5584_s15 = sld [smem:[#allocation14_spill]] }
  0x35   :  { %4556 = vmatprep.subr.bf16.mxu1 %v4555_v14  ;;  %s4923_s16 = smov [#allocation3]  }
  0x36   :  { %s3965_s18 = sshll.u32 %s4923_s16, 4  ;;  %s3966_s18 = int_to_ptr.vmem [resolvable:$true] %s3965_s18 }
  0x37   :  { %4251 = vmatmul.mubr.msk.f32.vlgmr.msra.gmra.mrb[0].mxu1 %vm147_vm0, %v135_v11  ;;  %s4860_s22 = scalar_lea.vmem %s3966_s18, 256  ;;  %p4865_p1 = scmp.lt.s32.totalorder %s3966_s18, %s3966_s18 }
  0x38   :  { %4261 = vmatprep.mubr.msk.f32.mxu1 %vm147_vm0, %v5085_v5  ;;  %4558 = vmatpush3.bf16.msra.mxu1 %v4555_v14  ;;  %p4861_p0 = scmp.ne.s32.totalorder %s3966_s18, %s4860_s22  ;;  %p4866_p2 = scmp.lt.s32.totalorder %s4860_s22, %s4860_s22 }
  0x39   :  { %4560 = vmatprep.subr.bf16.mxu1 %v4559_v17 }
  0x3a   :  { %p4867_p3 = por %p4866_p2, %p4865_p1 }
  0x3c   :  { %4562 = vmatpush3.bf16.msra.mxu1 %v4559_v17  ;;  %p4868_p4 = pnand %p4867_p3, %p4861_p0 }
  0x3d   :  { %4269 = vmatprep.subr.mxu1 %v4913_v20 }
  0x3f   :  { %4262 = vmatmul.mubr.msk.f32.vlgmr.msra.gmra.mrb[2].mxu1 %vm147_vm0, %v5094_v9 }
  0x40   :  { %4271 = vmatprep.mubr.msk.f32.mxu1 %vm4916_vm1, %v4913_v20 }
 0x10a   :  { %v4252_v19 = vpop.f32.mrb[0].mxu1 }
 0x10b   :  { %v220_v21 = vpop.f32.mrb[1].mxu1  ;;  %v226_v23 = vadd.f32 %v4252_v19, %v4007_v18 }
 0x10c   :  { %v221_v22 = vadd.f32 %v4007_v18, %v220_v21 }
 0x10e   :  { %332 = vrot.lane.b32.xlu1 %v221_v22, %s4914_s0  ;;  %328 = vrot.lane.b32.xlu0 %v221_v22, %s4915_s5 }
 0x112   :  { %334 = vrot.lane.b32.xlu1 %v226_v23, %s4914_s0  ;;  %330 = vrot.lane.b32.xlu0 %v226_v23, %s4915_s5  ;;  %v4263_v32 = vpop.f32.mrb[2].mxu1 }
 0x113   :  { %v312_v33 = vpop.f32.mrb[3].mxu1  ;;  %v5160_v42 = vadd.f32 %v4263_v32, %v4010_v37 }
 0x114   :  { %v5151_v40 = vadd.f32 %v4010_v37, %v312_v33 }
 0x116   :  { %338 = vrot.lane.b32.xlu1 %v226_v23, %s4917_s9  ;;  %336 = vrot.lane.b32.xlu0 %v221_v22, %s4917_s9 }
 0x11a   :  { %437 = vrot.lane.b32.xlu1 %v226_v23, %s4918_s21  ;;  %360 = vrot.lane.b32.xlu0 %v221_v22, %s4918_s21 }
 0x180   :  { %v333_v24 = vpop.permute.xlu1 %332  ;;  %v329_v25 = vpop.permute.xlu0 %328 }
 0x181   :  { %513 = vrot.lane.b32.xlu0 %v329_v25, %s4918_s21 }
 0x184   :  { %v335_v26 = vpop.permute.xlu1 %334  ;;  %v331_v27 = vpop.permute.xlu0 %330 }
 0x185   :  { %665 = vrot.lane.b32.xlu0 %v333_v24, %s4918_s21  ;;  %589 = vrot.lane.b32.xlu1 %v331_v27, %s4918_s21 }
 0x188   :  { %v339_v28 = vpop.permute.xlu1 %338  ;;  %v337_v29 = vpop.permute.xlu0 %336 }
 0x189   :  { %741 = vrot.lane.b32.xlu1 %v335_v26, %s4918_s21  ;;  %817 = vrot.lane.b32.xlu0 %v337_v29, %s4918_s21 }
 0x18c   :  { %v438_v30 = vpop.permute.xlu1 %437  ;;  %v361_v31 = vpop.permute.xlu0 %360 }
 0x18d   :  { %4270 = vmatpush3.xpose.msk.msra.mxu1 %vm362_vm2, %v438_v30  ;;  %893 = vrot.lane.b32.xlu1 %v339_v28, %s4918_s21 }
 0x18e   :  { %4265 = vmatpush3.xpose.msk.msra.mxu0 %vm362_vm2, %v361_v31  ;;  %4279 = vmatprep.subr.mxu1 %v4913_v20 }
 0x18f   :  { %4274 = vmatprep.subr.mxu0 %v4913_v20 }
 0x190   :  { %4272 = vmatmul.mubr.msk.f32.vlgmr.msra.gmra.mrb[4].mxu1 %vm362_vm2, %v226_v23 }
 0x191   :  { %4267 = vmatmul.mubr.msk.f32.vlgmr.msra.gmra.mrb[0].mxu0 %vm362_vm2, %v221_v22  ;;  %4281 = vmatprep.mubr.msk.f32.mxu1 %vm4916_vm1, %v4913_v20 }
 0x192   :  { %4276 = vmatprep.mubr.msk.f32.mxu0 %vm4916_vm1, %v4913_v20 }
 0x1f3   :  { %v514_v34 = vpop.permute.xlu0 %513 }
 0x1f4   :  { %4275 = vmatpush3.xpose.msk.msra.mxu0 %vm362_vm2, %v514_v34 }
 0x1f5   :  { %4284 = vmatprep.subr.mxu0 %v4913_v20 }
 0x1f7   :  { %v590_v35 = vpop.permute.xlu1 %589  ;;  %4277 = vmatmul.mubr.msk.f32.vlgmr.msra.gmra.mrb[2].mxu0 %vm362_vm2, %v329_v25  ;;  %v666_v36 = vpop.permute.xlu0 %665 }
 0x1f8   :  { %4280 = vmatpush3.xpose.msk.msra.mxu1 %vm362_vm2, %v590_v35  ;;  %4285 = vmatpush3.xpose.msk.msra.mxu0 %vm362_vm2, %v666_v36 }
 0x1f9   :  { %4286 = vmatprep.mubr.msk.f32.mxu0 %vm4916_vm1, %v4913_v20  ;;  %4289 = vmatprep.subr.mxu1 %v4913_v20 }
 0x1fa   :  { %4294 = vmatprep.subr.mxu0 %v4913_v20 }
 0x1fb   :  { %4282 = vmatmul.mubr.msk.f32.vlgmr.msra.gmra.mrb[6].mxu1 %vm362_vm2, %v331_v27  ;;  %v742_v38 = vpop.permute.xlu1 %741  ;;  %4287 = vmatmul.mubr.msk.f32.vlgmr.msra.gmra.mrb[4].mxu0 %vm362_vm2, %v333_v24  ;;  %v818_v39 = vpop.permute.xlu0 %817 }
 0x1fc   :  { %4290 = vmatpush3.xpose.msk.msra.mxu1 %vm362_vm2, %v742_v38  ;;  %4295 = vmatpush3.xpose.msk.msra.mxu0 %vm362_vm2, %v818_v39 }
 0x1fd   :  { %4291 = vmatprep.mubr.msk.f32.mxu1 %vm4916_vm1, %v4913_v20  ;;  %4296 = vmatprep.mubr.msk.f32.mxu0 %vm4916_vm1, %v4913_v20 }
 0x1fe   :  { %4299 = vmatprep.subr.mxu1 %v4913_v20  ;;  %4304 = vmatprep.subr.mxu0 %v4913_v20 }
 0x1ff   :  { %4292 = vmatmul.mubr.msk.f32.vlgmr.msra.gmra.mrb[8].mxu1 %vm362_vm2, %v335_v26  ;;  %v894_v41 = vpop.permute.xlu1 %893  ;;  %4297 = vmatmul.mubr.msk.f32.vlgmr.msra.gmra.mrb[6].mxu0 %vm362_vm2, %v337_v29 }
 0x200   :  { %4300 = vmatpush3.xpose.msk.msra.mxu1 %vm362_vm2, %v894_v41  ;;  %4301 = vmatprep.mubr.msk.f32.mxu1 %vm4916_vm1, %v4913_v20 }
 0x201   :  { %4309 = vmatprep.subr.mxu1 %v4913_v20  ;;  %4305 = vmatpush3.msra.mxu0 %v5151_v40 }
 0x202   :  { %4306 = vmatprep.mubr.msk.f32.mxu0 %vm4916_vm1, %v4913_v20  ;;  %4314 = vmatprep.subr.mxu0 %v4913_v20 }
 0x203   :  { %4302 = vmatmul.mubr.msk.f32.vlgmr.msra.gmra.mrb[10].mxu1 %vm362_vm2, %v339_v28 }
 0x204   :  { %4310 = vmatpush3.msra.mxu1 %v5160_v42  ;;  %4311 = vmatprep.mubr.msk.f32.mxu1 %vm4916_vm1, %v4913_v20 }
 0x205   :  { %4319 = vmatprep.subr.mxu1 %v4913_v20 }
 0x263   :  { %v509_v43 = vpop.f32.mrb[4].mxu1 }
 0x264   :  { %v433_v44 = vpop.f32.mrb[0].mxu0  ;;  %v4273_v45 = vpop.f32.mrb[5].mxu1  ;;  %v972_v46 = vsel %vm362_vm2, %v509_v43, -inf }
 0x265   :  { %v4268_v47 = vpop.f32.mrb[1].mxu0  ;;  %973 = vmax.xlane.f32.xlu1 %v972_v46  ;;  %v969_v48 = vsel %vm362_vm2, %v433_v44, -inf }
 0x266   :  { %970 = vmax.xlane.f32.xlu0 %v969_v48 }
 0x2ca   :  { %v585_v49 = vpop.f32.mrb[2].mxu0 }
 0x2cb   :  { %v4278_v50 = vpop.f32.mrb[3].mxu0  ;;  %v975_v51 = vsel %vm362_vm2, %v585_v49, -inf }
 0x2cc   :  { %976 = vmax.xlane.f32.xlu0 %v975_v51 }
 0x2ce   :  { %v661_v52 = vpop.f32.mrb[6].mxu1  ;;  %v737_v53 = vpop.f32.mrb[4].mxu0 }
 0x2cf   :  { %v4283_v54 = vpop.f32.mrb[7].mxu1  ;;  %v4288_v55 = vpop.f32.mrb[5].mxu0  ;;  %v978_v56 = vsel %vm362_vm2, %v661_v52, -inf  ;;  %v981_v57 = vsel %vm362_vm2, %v737_v53, -inf }
 0x2d0   :  { %979 = vmax.xlane.f32.xlu0 %v978_v56  ;;  %982 = vmax.xlane.f32.xlu1 %v981_v57 }
 0x2d2   :  { %v813_v58 = vpop.f32.mrb[8].mxu1  ;;  %v889_v59 = vpop.f32.mrb[6].mxu0 }
 0x2d3   :  { %v4293_v60 = vpop.f32.mrb[9].mxu1  ;;  %v4298_v61 = vpop.f32.mrb[7].mxu0  ;;  %v984_v62 = vsel %vm362_vm2, %v813_v58, -inf  ;;  %v987_v63 = vsel %vm362_vm2, %v889_v59, -inf }
 0x2d4   :  { %985 = vmax.xlane.f32.xlu0 %v984_v62  ;;  %988 = vmax.xlane.f32.xlu1 %v987_v63 }
 0x2d6   :  { %v965_v0 = vpop.f32.mrb[10].mxu1 }
 0x2d7   :  { %v4303_v1 = vpop.f32.mrb[11].mxu1  ;;  %v990_v2 = vsel %vm362_vm2, %v965_v0, -inf }
 0x2d8   :  { %991 = vmax.xlane.f32.xlu0 %v990_v2 }
 0x2e5   :  { %342 = vrot.lane.b32.xlu1 %v5151_v40, %s4915_s5 }
 0x2e9   :  { %348 = vrot.lane.b32.xlu1 %v5151_v40, %s4914_s0 }
 0x2ed   :  { %350 = vrot.lane.b32.xlu1 %v5160_v42, %s4914_s0 }
 0x2ee   :  { %344 = vrot.lane.b32.xlu0 %v5160_v42, %s4915_s5 }
 0x2f2   :  { %v974_v3 = vpop.xlane.xlu1 %973 }
 0x2f3   :  { %v994_v4 = vsub.f32 %v509_v43, %v974_v3  ;;  %v971_v7 = vpop.xlane.xlu0 %970 }
 0x2f4   :  { %v993_v11 = vsub.f32 %v433_v44, %v971_v7 }
 0x2f5   :  { %v1003_v8 = vmul.f32 1.442695, %v994_v4 }
 0x2f6   :  { %v1001_v12 = vmul.f32 1.442695, %v993_v11 }
 0x2f7   :  { %4784 = vpow2.f32 %v1003_v8 }
 0x2f8   :  { %4786 = vpow2.f32 %v1001_v12 }
 0x301   :  { %v5188_v13 = vpop.eup %4784 }
 0x302   :  { %v1020_v14 = vsel %vm362_vm2, %v5188_v13, 0.0  ;;  %v5192_v15 = vpop.eup %4786 }
 0x303   :  { %v1017_v16 = vsel %vm362_vm2, %v5192_v15, 0.0 }
 0x30d   :  { %1021 = vadd.xlane.f32.xlu0 %v1020_v14 }
 0x311   :  { %1018 = vadd.xlane.f32.xlu1 %v1017_v16 }
 0x359   :  { %v977_v17 = vpop.xlane.xlu0 %976 }
 0x35a   :  { %v995_v18 = vsub.f32 %v585_v49, %v977_v17 }
 0x35c   :  { %v1005_v19 = vmul.f32 1.442695, %v995_v18 }
 0x35d   :  { %v983_v21 = vpop.xlane.xlu1 %982  ;;  %v980_v22 = vpop.xlane.xlu0 %979 }
 0x35e   :  { %4788 = vpow2.f32 %v1005_v19  ;;  %v997_v23 = vsub.f32 %v737_v53, %v983_v21  ;;  %v996_v24 = vsub.f32 %v661_v52, %v980_v22 }
 0x360   :  { %v1009_v25 = vmul.f32 1.442695, %v997_v23  ;;  %v1007_v26 = vmul.f32 1.442695, %v996_v24 }
 0x361   :  { %v989_v27 = vpop.xlane.xlu1 %988  ;;  %v986_v28 = vpop.xlane.xlu0 %985 }
 0x362   :  { %4790 = vpow2.f32 %v1009_v25  ;;  %v999_v29 = vsub.f32 %v889_v59, %v989_v27  ;;  %v998_v30 = vsub.f32 %v813_v58, %v986_v28 }
 0x363   :  { %4792 = vpow2.f32 %v1007_v26 }
 0x364   :  { %v1013_v31 = vmul.f32 1.442695, %v999_v29  ;;  %v1011_v32 = vmul.f32 1.442695, %v998_v30 }
 0x365   :  { %v992_v33 = vpop.xlane.xlu0 %991  ;;  %v343_v50 = vpop.permute.xlu1 %342 }
 0x366   :  { %4794 = vpow2.f32 %v1013_v31  ;;  %v1000_v34 = vsub.f32 %v965_v0, %v992_v33 }
 0x367   :  { %4796 = vpow2.f32 %v1011_v32 }
 0x368   :  { %v5196_v35 = vpop.eup %4788  ;;  %v1015_v36 = vmul.f32 1.442695, %v1000_v34 }
 0x369   :  { %v1023_v37 = vsel %vm362_vm2, %v5196_v35, 0.0  ;;  %v349_v51 = vpop.permute.xlu1 %348  ;;  %v345_v52 = vpop.permute.xlu0 %344 }
 0x36a   :  { %4798 = vpow2.f32 %v1015_v36  ;;  %1024 = vadd.xlane.f32.xlu1 %v1023_v37 }
 0x36c   :  { %v5200_v38 = vpop.eup %4790 }
 0x36d   :  { %v5202_v39 = vpop.eup %4792  ;;  %v1029_v41 = vsel %vm362_vm2, %v5200_v38, 0.0  ;;  %v5224_v53 = vpop.permute.xlu1 %350 }
 0x36e   :  { %1030 = vadd.xlane.f32.xlu1 %v1029_v41  ;;  %v1026_v43 = vsel %vm362_vm2, %v5202_v39, 0.0 }
 0x36f   :  { %1027 = vadd.xlane.f32.xlu0 %v1026_v43 }
 0x370   :  { %v5208_v44 = vpop.eup %4794 }
 0x371   :  { %v5210_v45 = vpop.eup %4796  ;;  %v1035_v46 = vsel %vm362_vm2, %v5208_v44, 0.0 }
 0x372   :  { %1036 = vadd.xlane.f32.xlu1 %v1035_v46  ;;  %v1032_v47 = vsel %vm362_vm2, %v5210_v45, 0.0 }
 0x373   :  { %1033 = vadd.xlane.f32.xlu0 %v1032_v47 }
 0x374   :  { %v5216_v48 = vpop.eup %4798 }
 0x375   :  { %v1038_v49 = vsel %vm362_vm2, %v5216_v48, 0.0 }
 0x377   :  { %1039 = vadd.xlane.f32.xlu0 %v1038_v49 }
 0x383   :  { %356 = vrot.lane.b32.xlu1 %v5160_v42, %s4917_s9 }
 0x38d   :  { %354 = vrot.lane.b32.xlu0 %v5151_v40, %s4917_s9 }
 0x39a   :  { %v1022_v54 = vpop.xlane.xlu0 %1021 }
 0x39b   :  { %4800 = vrcp.f32 %v1022_v54 }
 0x39e   :  { %v1019_v55 = vpop.xlane.xlu1 %1018 }
 0x39f   :  { %4802 = vrcp.f32 %v1019_v55 }
 0x3a5   :  { %v4801_v56 = vpop.eup %4800 }
 0x3a6   :  { %v1050_v57 = vmul.f32 %v4801_v56, %v1022_v54 }
 0x3a8   :  { %v1058_v58 = vsub.f32 2.0, %v1050_v57 }
 0x3a9   :  { %v4803_v59 = vpop.eup %4802 }
 0x3aa   :  { %v1066_v60 = vmul.f32 %v4801_v56, %v1058_v58  ;;  %v1049_v61 = vmul.f32 %v4803_v59, %v1019_v55  ;;  %v324_v55 = vld [vmem:[%s4973_s8 + $0x18] sm:$0xff] }
 0x3ac   :  { %v1074_v42 = vmul.f32 %v5188_v13, %v1066_v60  ;;  %v1057_v62 = vsub.f32 2.0, %v1049_v61 }
 0x3ae   :  { %v1065_v63 = vmul.f32 %v4803_v59, %v1057_v62  ;;  %4312 = vmatmul.mubr.msk.f32.vlgmr.msra.gmra.mrb[12].mxu1 %vm362_vm2, %v1074_v42 }
 0x3af   :  { %4320 = vmatpush3.msra.mxu1 %v345_v52  ;;  %4321 = vmatprep.mubr.msk.f32.mxu1 %vm4916_vm1, %v4913_v20 }
 0x3b0   :  { %v1073_v40 = vmul.f32 %v5192_v15, %v1065_v63  ;;  %4329 = vmatprep.subr.mxu1 %v4913_v20 }
 0x3b2   :  { %4307 = vmatmul.mubr.msk.f32.vlgmr.msra.gmra.mrb[8].mxu0 %vm362_vm2, %v1073_v40 }
 0x3b3   :  { %4315 = vmatpush3.msra.mxu0 %v343_v50  ;;  %4316 = vmatprep.mubr.msk.f32.mxu0 %vm4916_vm1, %v4913_v20  ;;  %v321_v50 = vld [vmem:[%s4973_s8] sm:$0xff] }
 0x3b4   :  { %4324 = vmatprep.subr.mxu0 %v4913_v20 }
 0x3f7   :  { %v1025_v0 = vpop.xlane.xlu1 %1024 }
 0x3f8   :  { %4804 = vrcp.f32 %v1025_v0 }
 0x3fb   :  { %v1031_v1 = vpop.xlane.xlu1 %1030 }
 0x3fc   :  { %4806 = vrcp.f32 %v1031_v1  ;;  %v1028_v2 = vpop.xlane.xlu0 %1027 }
 0x3fd   :  { %4808 = vrcp.f32 %v1028_v2 }
 0x3ff   :  { %v1037_v3 = vpop.xlane.xlu1 %1036 }
 0x400   :  { %4810 = vrcp.f32 %v1037_v3  ;;  %v1034_v4 = vpop.xlane.xlu0 %1033 }
 0x401   :  { %4812 = vrcp.f32 %v1034_v4 }
 0x402   :  { %v4805_v7 = vpop.eup %4804 }
 0x403   :  { %v1051_v8 = vmul.f32 %v4805_v7, %v1025_v0  ;;  %v357_v41 = vpop.permute.xlu1 %356 }
 0x404   :  { %v1040_v11 = vpop.xlane.xlu0 %1039 }
 0x405   :  { %v1059_v12 = vsub.f32 2.0, %v1051_v8  ;;  %4814 = vrcp.f32 %v1040_v11 }
 0x406   :  { %v4807_v13 = vpop.eup %4806 }
 0x407   :  { %v4809_v14 = vpop.eup %4808  ;;  %v1067_v15 = vmul.f32 %v4805_v7, %v1059_v12  ;;  %v1053_v16 = vmul.f32 %v4807_v13, %v1031_v1 }
 0x408   :  { %v1052_v17 = vmul.f32 %v4809_v14, %v1028_v2  ;;  %v355_v34 = vpop.permute.xlu0 %354 }
 0x409   :  { %v1075_v18 = vmul.f32 %v5196_v35, %v1067_v15  ;;  %v1061_v19 = vsub.f32 2.0, %v1053_v16 }
 0x40a   :  { %v4811_v21 = vpop.eup %4810  ;;  %v1060_v22 = vsub.f32 2.0, %v1052_v17 }
 0x40b   :  { %v4813_v23 = vpop.eup %4812  ;;  %v1069_v24 = vmul.f32 %v4807_v13, %v1061_v19  ;;  %v1055_v25 = vmul.f32 %v4811_v21, %v1037_v3  ;;  %4317 = vmatmul.mubr.msk.f32.vlgmr.msra.gmra.mrb[10].mxu0 %vm362_vm2, %v1075_v18  ;;  %v4037_v13 = vld [vmem:[%s4978_s14] ss:$0 sm:$0xff]  ;;  %s5576_s14 = sld [smem:[#allocation8_spill]] }
 0x40c   :  { %v1068_v26 = vmul.f32 %v4809_v14, %v1060_v22  ;;  %v1054_v27 = vmul.f32 %v4813_v23, %v1034_v4  ;;  %4325 = vmatpush3.msra.mxu0 %v349_v51  ;;  %4326 = vmatprep.mubr.msk.f32.mxu0 %vm4916_vm1, %v4913_v20  ;;  %v322_v51 = vld [vmem:[%s4973_s8 + $0x8] sm:$0xff] }
 0x40d   :  { %v1077_v28 = vmul.f32 %v5200_v38, %v1069_v24  ;;  %v1063_v29 = vsub.f32 2.0, %v1055_v25  ;;  %4334 = vmatprep.subr.mxu0 %v4913_v20  ;;  %v1935_v24 = vld [vmem:[%s4993_s30 + $0x8] sm:$0xff] }
 0x40e   :  { %v1076_v30 = vmul.f32 %v5202_v39, %v1068_v26  ;;  %v1062_v31 = vsub.f32 2.0, %v1054_v27 }
 0x40f   :  { %v4815_v32 = vpop.eup %4814  ;;  %v1071_v33 = vmul.f32 %v4811_v21, %v1063_v29  ;;  %4327 = vmatmul.mubr.msk.f32.vlgmr.msra.gmra.mrb[12].mxu0 %vm362_vm2, %v1077_v28 }
 0x410   :  { %v1070_v35 = vmul.f32 %v4813_v23, %v1062_v31  ;;  %v1056_v36 = vmul.f32 %v4815_v32, %v1040_v11  ;;  %4322 = vmatmul.mubr.msk.f32.vlgmr.msra.gmra.mrb[14].mxu1 %vm362_vm2, %v1076_v30  ;;  %4335 = vmatpush3.msra.mxu0 %v355_v34  ;;  %v1934_v23 = vld [vmem:[%s4993_s30] sm:$0xff]  ;;  %v1936_v34 = vld [vmem:[%s4993_s30 + $0x10] sm:$0xff] }
 0x411   :  { %v1079_v37 = vmul.f32 %v5208_v44, %v1071_v33  ;;  %4330 = vmatpush3.msra.mxu1 %v5224_v53  ;;  %4331 = vmatprep.mubr.msk.f32.mxu1 %vm4916_vm1, %v4913_v20  ;;  %v4563_v53 = vpack.c.bf16 %v322_v51, %v321_v50  ;;  %v4579_v25 = vpack.c.bf16 %v1935_v24, %v1934_v23  ;;  %v133_v50 = vld [vmem:[%s4948_s17 + $0x18] sm:$0xff] }
 0x412   :  { %v1078_v38 = vmul.f32 %v5210_v45, %v1070_v35  ;;  %v1064_v39 = vsub.f32 2.0, %v1056_v36  ;;  %4336 = vmatprep.mubr.msk.f32.mxu0 %vm4916_vm1, %v4913_v20  ;;  %4339 = vmatprep.subr.mxu1 %v4913_v20  ;;  %v1937_v35 = vld [vmem:[%s4993_s30 + $0x18] sm:$0xff]  ;;  %s5579_s30 = sld [smem:[#allocation11_spill]] }
 0x413   :  { %4337 = vmatmul.mubr.msk.f32.vlgmr.msra.gmra.mrb[14].mxu0 %vm362_vm2, %v1079_v37  ;;  %4564 = vmatprep.subr.bf16.mxu0 %v4563_v53  ;;  %v4583_v36 = vpack.c.bf16 %v1937_v35, %v1936_v34  ;;  %v126_v37 = vld [vmem:[%s4943_s13] sm:$0xff] }
 0x414   :  { %v1072_v43 = vmul.f32 %v4815_v32, %v1064_v39  ;;  %4332 = vmatmul.mubr.msk.f32.vlgmr.msra.gmra.mrb[16].mxu1 %vm362_vm2, %v1078_v38  ;;  %4566 = vmatpush3.bf16.msra.mxu0 %v4563_v53  ;;  %v130_v38 = vld [vmem:[%s4948_s17] sm:$0xff]  ;;  %v1839_v53 = vld [vmem:[%s4983_s19 + $0x8] sm:$0xff] }
 0x415   :  { %4340 = vmatpush3.msra.mxu1 %v357_v41  ;;  %4341 = vmatprep.mubr.msk.f32.mxu1 %vm4916_vm1, %v4913_v20  ;;  %v1930_v39 = vadd.f32 %v130_v38, %v126_v37  ;;  %v127_v41 = vld [vmem:[%s4943_s13 + $0x8] sm:$0xff] }
 0x416   :  { %v1080_v44 = vmul.f32 %v5216_v48, %v1072_v43  ;;  %v323_v48 = vld [vmem:[%s4973_s8 + $0x10] sm:$0xff]  ;;  %v131_v43 = vld [vmem:[%s4948_s17 + $0x8] sm:$0xff]  ;;  %s5575_s8 = sld [smem:[#allocation6_spill]] }
 0x417   :  { %v4567_v56 = vpack.c.bf16 %v324_v55, %v323_v48  ;;  %v1840_v48 = vld [vmem:[%s4983_s19 + $0x10] sm:$0xff]  ;;  %v1841_v55 = vld [vmem:[%s4983_s19 + $0x18] sm:$0xff] }
 0x418   :  { %4342 = vmatmul.mubr.msk.f32.vlgmr.msra.gmra.mrb[18].mxu1 %vm362_vm2, %v1080_v44  ;;  %v1931_v44 = vadd.f32 %v131_v43, %v127_v41 }
 0x419   :  { %4568 = vmatprep.subr.bf16.mxu0 %v4567_v56 }
 0x41a   :  { %4570 = vmatpush3.bf16.msra.mxu0 %v4567_v56  ;;  %v4575_v56 = vpack.c.bf16 %v1841_v55, %v1840_v48 }
 0x41b   :  { %4580 = vmatprep.subr.bf16.mxu0 %v4579_v25 }
 0x481   :  { %v1223_v45 = vpop.f32.mrb[12].mxu1 }
 0x482   :  { %1666 = vst.msk [vmem:[#allocation2 + $0x8] sm:$0xff] %vm362_vm2, %v1223_v45  ;;  %v4313_v46 = vpop.f32.mrb[13].mxu1  ;;  %v128_v45 = vld [vmem:[%s4943_s13 + $0x10] sm:$0xff] }
 0x483   :  { %v132_v46 = vld [vmem:[%s4948_s17 + $0x10] sm:$0xff]  ;;  %s5572_s17 = sld [smem:[#allocation7_spill]] }
 0x485   :  { %v1150_v47 = vpop.f32.mrb[8].mxu0 }
 0x486   :  { %1665 = vst.msk [vmem:[#allocation2] sm:$0xff] %vm362_vm2, %v1150_v47  ;;  %v4308_v49 = vpop.f32.mrb[9].mxu0  ;;  %v1932_v47 = vadd.f32 %v132_v46, %v128_v45 }
 0x487   :  { %v129_v49 = vld [vmem:[%s4943_s13 + $0x18] sm:$0xff]  ;;  %s5571_s13 = sld [smem:[#allocation15_spill]] }
 0x488   :  { %v1933_v51 = vadd.f32 %v133_v50, %v129_v49 }
 0x4de   :  { %v1296_v52 = vpop.f32.mrb[10].mxu0 }
 0x4df   :  { %v4318_v54 = vpop.f32.mrb[11].mxu0  ;;  %1669 = vrot.lane.b32.xlu0 %v1296_v52, %s4919_s25  ;;  %v1838_v52 = vld [vmem:[%s4983_s19] sm:$0xff]  ;;  %s5577_s19 = sld [smem:[#allocation9_spill]] }
 0x4e0   :  { %v4571_v54 = vpack.c.bf16 %v1839_v53, %v1838_v52 }
 0x4e2   :  { %v1442_v57 = vpop.f32.mrb[12].mxu0  ;;  %4572 = vmatprep.subr.bf16.mxu1 %v4571_v54 }
 0x4e3   :  { %v1369_v58 = vpop.f32.mrb[14].mxu1  ;;  %v4328_v59 = vpop.f32.mrb[13].mxu0  ;;  %1680 = vrot.lane.b32.xlu0 %v1442_v57, %s4920_s29  ;;  %4574 = vmatpush3.bf16.msra.mxu1 %v4571_v54  ;;  %v2042_v57 = vld [vmem:[%s5003_s12] sm:$0xff] }
 0x4e4   :  { %1671 = vrot.lane.b32.xlu1 %v1369_v58, %s4919_s25  ;;  %v4323_v60 = vpop.f32.mrb[15].mxu1  ;;  %4576 = vmatprep.subr.bf16.mxu1 %v4575_v56  ;;  %v2043_v58 = vld [vmem:[%s5003_s12 + $0x8] sm:$0xff] }
 0x4e5   :  { %v4587_v59 = vpack.c.bf16 %v2043_v58, %v2042_v57  ;;  %v4922_v60 = vmov 0.0|0.0  }
 0x4e6   :  { %v1588_v61 = vpop.f32.mrb[14].mxu0 }
 0x4e7   :  { %v1515_v42 = vpop.f32.mrb[16].mxu1  ;;  %1691 = vrot.lane.b32.xlu0 %v1588_v61, %s4921_s3  ;;  %v4338_v62 = vpop.f32.mrb[15].mxu0  ;;  %4578 = vmatpush3.bf16.msra.mxu1 %v4575_v56 }
 0x4e8   :  { %1682 = vrot.lane.b32.xlu1 %v1515_v42, %s4920_s29  ;;  %v4333_v63 = vpop.f32.mrb[17].mxu1  ;;  %4588 = vmatprep.subr.bf16.mxu1 %v4587_v59 }
 0x4eb   :  { %v1661_v40 = vpop.f32.mrb[18].mxu1 }
 0x4ec   :  { %1693 = vrot.lane.b32.xlu1 %v1661_v40, %s4921_s3  ;;  %v4343_v0 = vpop.f32.mrb[19].mxu1 }
 0x551   :  { %v1670_v1 = vpop.permute.xlu0 %1669 }
 0x552   :  { %1676 = vst.msk [vmem:[#allocation2] sm:$0xff] %vm1675_vm3, %v1670_v1 }
 0x555   :  { %v1681_v2 = vpop.permute.xlu0 %1680 }
 0x556   :  { %v1672_v3 = vpop.permute.xlu1 %1671  ;;  %1687 = vst.msk [vmem:[#allocation2] sm:$0xff] %vm1686_vm4, %v1681_v2  ;;  %v4040_v2 = vld [vmem:[%s5043_s24] ss:$0 sm:$0xff]  ;;  %s5578_s24 = sld [smem:[#allocation10_spill]] }
 0x557   :  { %1677 = vst.msk [vmem:[#allocation2 + $0x8] sm:$0xff] %vm1675_vm3, %v1672_v3 }
 0x559   :  { %v1692_v4 = vpop.permute.xlu0 %1691 }
 0x55a   :  { %v1683_v7 = vpop.permute.xlu1 %1682  ;;  %1698 = vst.msk [vmem:[#allocation2] sm:$0xff] %vm1697_vm5, %v1692_v4  ;;  %v4041_v4 = vld [vmem:[%s5571_s13] ss:$0 sm:$0xff] }
 0x55b   :  { %1688 = vst.msk [vmem:[#allocation2 + $0x8] sm:$0xff] %vm1686_vm4, %v1683_v7 }
 0x55e   :  { %v1694_v8 = vpop.permute.xlu1 %1693 }
 0x55f   :  { %1699 = vst.msk [vmem:[#allocation2 + $0x8] sm:$0xff] %vm1697_vm5, %v1694_v8 }
 0x561   :  { %v1700_v11 = vld [vmem:[#allocation2] sm:$0xff] }
 0x562   :  { %4352 = vmatprep.mubr.msk.f32.mxu0 %vm147_vm0, %v1700_v11 }
 0x566   :  { %v1701_v12 = vld [vmem:[#allocation2 + $0x8] sm:$0xff] }
 0x567   :  { %4353 = vmatmul.mubr.msk.f32.vlgmr.msra.gmra.mrb[16].mxu0 %vm147_vm0, %v1701_v12 }
 0x568   :  { %4582 = vmatpush3.bf16.msra.mxu0 %v4579_v25  ;;  %4374 = vmatprep.mubr.msk.f32.mxu0 %vm147_vm0, %v1930_v39 }
 0x569   :  { %4584 = vmatprep.subr.bf16.mxu0 %v4583_v36 }
 0x56c   :  { %4586 = vmatpush3.bf16.msra.mxu0 %v4583_v36 }
 0x56d   :  { %4595 = vmatprep.subr.bf16.mxu0 %v4922_v60 }
 0x56f   :  { %4375 = vmatmul.mubr.msk.f32.vlgmr.msra.gmra.mrb[18].mxu0 %vm147_vm0, %v1931_v44 }
 0x570   :  { %4377 = vmatprep.mubr.msk.f32.mxu0 %vm147_vm0, %v1932_v47 }
 0x573   :  { %4378 = vmatmul.mubr.msk.f32.gmra.mrb[20].mxu0 %vm147_vm0, %v1933_v51 }
 0x574   :  { %4398 = vmatprep.mubr.msk.f32.mxu0 %vm4916_vm1, %v4913_v20 }
 0x63a   :  { %v4354_v14 = vpop.f32.mrb[16].mxu0 }
 0x63b   :  { %v1786_v15 = vadd.f32 %v4354_v14, %v4037_v13  ;;  %v1780_v16 = vpop.f32.mrb[17].mxu0 }
 0x63c   :  { %v1781_v17 = vadd.f32 %v4037_v13, %v1780_v16  ;;  %v2045_v16 = vld [vmem:[%s5003_s12 + $0x18] sm:$0xff] }
 0x63d   :  { %v1790_v18 = vadd.f32 %v1786_v15, %v5094_v9  ;;  %v2044_v15 = vld [vmem:[%s5003_s12 + $0x10] sm:$0xff]  ;;  %s5580_s12 = sld [smem:[#allocation13_spill]] }
 0x63e   :  { %v1789_v19 = vadd.f32 %v1781_v17, %v5085_v5 }
 0x63f   :  { %v1796_v21 = vsel %vm147_vm0, %v1790_v18, 0.0 }
 0x640   :  { %1797 = vadd.xlane.f32.xlu1 %v1796_v21  ;;  %v1793_v22 = vsel %vm147_vm0, %v1789_v19, 0.0 }
 0x641   :  { %1794 = vadd.xlane.f32.xlu0 %v1793_v22 }
 0x6cd   :  { %v1798_v26 = vpop.xlane.xlu1 %1797 }
 0x6ce   :  { %v1801_v27 = vmul.f32 0.03125, %v1798_v26  ;;  %v1795_v9 = vpop.xlane.xlu0 %1794 }
 0x6cf   :  { %v1800_v28 = vmul.f32 0.03125, %v1795_v9 }
 0x6d0   :  { %v1803_v5 = vsub.f32 %v1790_v18, %v1801_v27 }
 0x6d1   :  { %v1802_v29 = vsub.f32 %v1789_v19, %v1800_v28  ;;  %v4591_v19 = vpack.c.bf16 %v2045_v16, %v2044_v15 }
 0x6d2   :  { %v1805_v32 = vmul.f32 %v1803_v5, %v1803_v5 }
 0x6d3   :  { %v1804_v30 = vmul.f32 %v1802_v29, %v1802_v29 }
 0x6d4   :  { %v1809_v33 = vsel %vm147_vm0, %v1805_v32, 0.0 }
 0x6d5   :  { %v1806_v31 = vsel %vm147_vm0, %v1804_v30, 0.0 }
 0x6d6   :  { %1807 = vadd.xlane.f32.xlu0 %v1806_v31 }
 0x6da   :  { %1810 = vadd.xlane.f32.xlu0 %v1809_v33 }
 0x763   :  { %v1808_v61 = vpop.xlane.xlu0 %1807 }
 0x764   :  { %v1812_v42 = vmul.f32 0.03125, %v1808_v61 }
 0x766   :  { %v1814_v62 = vadd.f32 1e-05, %v1812_v42 }
 0x767   :  { %v1811_v63 = vpop.xlane.xlu0 %1810 }
 0x768   :  { %4816 = vrsqrt.f32 %v1814_v62  ;;  %v1813_v40 = vmul.f32 0.03125, %v1811_v63 }
 0x76a   :  { %v1815_v0 = vadd.f32 1e-05, %v1813_v40 }
 0x76c   :  { %4818 = vrsqrt.f32 %v1815_v0 }
 0x772   :  { %v4817_v1 = vpop.eup %4816 }
 0x773   :  { %v1818_v3 = vmul.f32 %v4817_v1, %v1802_v29 }
 0x775   :  { %v1826_v7 = vmul.f32 %v4040_v2, %v1818_v3 }
 0x776   :  { %v4819_v8 = vpop.eup %4818 }
 0x777   :  { %v1819_v11 = vmul.f32 %v4819_v8, %v1803_v5  ;;  %v5313_v12 = vadd.f32 %v4041_v4, %v1826_v7 }
 0x779   :  { %v1827_v13 = vmul.f32 %v4040_v2, %v1819_v11  ;;  %v1836_v14 = vadd.f32 %v5313_v12, %v5088_v6  ;;  %v4045_v6 = vld [vmem:[%s5572_s17] ss:$0 sm:$0xff] }
 0x77b   :  { %v5319_v17 = vadd.f32 %v4041_v4, %v1827_v13  ;;  %4363 = vmatprep.mubr.msk.f32.mxu1 %vm147_vm0, %v1836_v14  ;;  %v4050_v4 = vld [vmem:[%s5576_s14] ss:$0 sm:$0xff] }
 0x77d   :  { %v1837_v18 = vadd.f32 %v5319_v17, %v5097_v10  ;;  %v4376_v10 = vpop.f32.mrb[18].mxu0 }
 0x77e   :  { %v2029_v21 = vadd.f32 %v4376_v10, %v4045_v6  ;;  %v2023_v22 = vpop.f32.mrb[19].mxu0 }
 0x77f   :  { %4364 = vmatmul.mubr.msk.f32.vlgmr.msra.gmra.mrb[20].mxu1 %vm147_vm0, %v1837_v18  ;;  %v2024_v23 = vadd.f32 %v4045_v6, %v2023_v22  ;;  %v4379_v27 = vpop.f32.mrb[20].mxu0 }
 0x780   :  { %4590 = vmatpush3.bf16.msra.mxu1 %v4587_v59  ;;  %4388 = vmatprep.mubr.msk.f32.mxu1 %vm147_vm0, %v126_v37  ;;  %v2039_v9 = vadd.f32 %v4379_v27, %v4045_v6  ;;  %v2033_v28 = vpop.f32.mrb[21].mxu0  ;;  %v4042_v37 = vld [vmem:[%s5575_s8] ss:$0 sm:$0xff] }
 0x781   :  { %4592 = vmatprep.subr.bf16.mxu1 %v4591_v19  ;;  %v4596_v25 = vpack.c.bf16 %v2029_v21, %v2024_v23  ;;  %v4724_v26 = vpack.i.bf16 %v2029_v21, %v2024_v23  ;;  %v2034_v5 = vadd.f32 %v4045_v6, %v2033_v28 }
 0x783   :  { %4725 = vrot.lane.b32.xlu1 %v4724_v26, %s4915_s5  ;;  %4598 = vmatpush3.bf16.xpose.msk.msra.mxu0 %vm5335_vm6, %v4596_v25  ;;  %v4600_v29 = vpack.c.bf16 %v2039_v9, %v2034_v5  ;;  %v4729_v30 = vpack.i.bf16 %v2039_v9, %v2034_v5 }
 0x784   :  { %4594 = vmatpush3.bf16.msra.mxu1 %v4591_v19  ;;  %4603 = vmatprep.subr.bf16.mxu0 %v4922_v60 }
 0x785   :  { %4599 = vmatprep.subr.bf16.mxu1 %v4922_v60  ;;  %4730 = vrot.lane.b32.xlu0 %v4729_v30, %s4915_s5 }
 0x787   :  { %4389 = vmatmul.mubr.msk.f32.vlgmr.msra.gmra.mrb[22].mxu1 %vm147_vm0, %v127_v41  ;;  %4735 = vrot.lane.b32.xlu1 %v4724_v26, %s4914_s0 }
 0x788   :  { %4391 = vmatprep.mubr.msk.f32.mxu1 %vm147_vm0, %v128_v45 }
 0x78b   :  { %4392 = vmatmul.mubr.msk.f32.gmra.mrb[24].mxu1 %vm147_vm0, %v129_v49  ;;  %4740 = vrot.lane.b32.xlu1 %v4729_v30, %s4914_s0 }
 0x78c   :  { %4405 = vmatprep.mubr.msk.f32.mxu1 %vm4916_vm1, %v4913_v20 }
 0x78d   :  { %4602 = vmatpush3.bf16.xpose.msk.msra.mxu1 %vm5335_vm6, %v4600_v29 }
 0x78e   :  { %4607 = vmatprep.subr.bf16.mxu1 %v4922_v60 }
 0x7f5   :  { %v4726_v32 = vpop.permute.xlu1 %4725 }
 0x7f6   :  { %v4728_v33 = vunpack.i.h.bf16 %v4726_v32  ;;  %v4727_v34 = vunpack.i.l.bf16 %v4726_v32 }
 0x7f7   :  { %v4731_v31 = vpop.permute.xlu0 %4730 }
 0x7f8   :  { %v4733_v35 = vunpack.i.h.bf16 %v4731_v31  ;;  %v4732_v36 = vunpack.i.l.bf16 %v4731_v31  ;;  %v4604_v43 = vpack.c.bf16 %v4728_v33, %v4727_v34 }
 0x7f9   :  { %v4736_v51 = vpop.permute.xlu1 %4735 }
 0x7fa   :  { %v4608_v44 = vpack.c.bf16 %v4733_v35, %v4732_v36  ;;  %v4738_v48 = vunpack.i.h.bf16 %v4736_v51  ;;  %v4737_v55 = vunpack.i.l.bf16 %v4736_v51 }
 0x7fc   :  { %v4612_v58 = vpack.c.bf16 %v4738_v48, %v4737_v55 }
 0x7fd   :  { %v4741_v52 = vpop.permute.xlu1 %4740 }
 0x7fe   :  { %v4743_v53 = vunpack.i.h.bf16 %v4741_v52  ;;  %v4742_v54 = vunpack.i.l.bf16 %v4741_v52 }
 0x800   :  { %v4616_v56 = vpack.c.bf16 %v4743_v53, %v4742_v54 }
 0x852   :  { %v4365_v38 = vpop.f32.mrb[20].mxu1 }
 0x853   :  { %v1927_v39 = vadd.f32 %v4365_v38, %v4042_v37  ;;  %v1921_v41 = vpop.f32.mrb[21].mxu1 }
 0x854   :  { %v1922_v45 = vadd.f32 %v4042_v37, %v1921_v41 }
 0x855   :  { %2159 = vrot.lane.b32.xlu1 %v1927_v39, %s4915_s5  ;;  %4406 = vmatmul.mubr.msk.f32.vlgmr.msra.gmra.mrb[26].mxu1 %vm362_vm2, %v1927_v39 }
 0x856   :  { %2157 = vrot.lane.b32.xlu0 %v1922_v45, %s4915_s5  ;;  %4399 = vmatmul.mubr.msk.f32.vlgmr.msra.gmra.mrb[22].mxu0 %vm362_vm2, %v1922_v45 }
 0x857   :  { %4606 = vmatpush3.bf16.xpose.msk.msra.mxu0 %vm5335_vm6, %v4604_v43  ;;  %4610 = vmatpush3.bf16.xpose.msk.msra.mxu1 %vm5335_vm6, %v4608_v44 }
 0x858   :  { %4419 = vmatprep.mubr.msk.f32.mxu1 %vm4916_vm1, %v4913_v20  ;;  %4615 = vmatprep.subr.bf16.mxu1 %v4922_v60 }
 0x859   :  { %4750 = vrot.lane.b32.xlu1 %v4729_v30, %s4917_s9  ;;  %4412 = vmatprep.mubr.msk.f32.mxu0 %vm4916_vm1, %v4913_v20 }
 0x85a   :  { %4745 = vrot.lane.b32.xlu0 %v4724_v26, %s4917_s9  ;;  %4611 = vmatprep.subr.bf16.mxu0 %v4922_v60  ;;  %v4390_v46 = vpop.f32.mrb[22].mxu1 }
 0x85b   :  { %v2131_v47 = vpop.f32.mrb[23].mxu1  ;;  %v2137_v13 = vadd.f32 %v4390_v46, %v4050_v4 }
 0x85c   :  { %v2132_v14 = vadd.f32 %v4050_v4, %v2131_v47 }
 0x85d   :  { %2163 = vrot.lane.b32.xlu1 %v1927_v39, %s4914_s0 }
 0x85e   :  { %2161 = vrot.lane.b32.xlu0 %v1922_v45, %s4914_s0  ;;  %v4393_v49 = vpop.f32.mrb[24].mxu1  ;;  %v4628_v16 = vpack.c.bf16 %v2137_v13, %v2132_v14  ;;  %v4754_v43 = vpack.i.bf16 %v2137_v13, %v2132_v14 }
 0x85f   :  { %v2141_v50 = vpop.f32.mrb[25].mxu1  ;;  %v2147_v8 = vadd.f32 %v4393_v49, %v4050_v4 }
 0x860   :  { %v2142_v11 = vadd.f32 %v4050_v4, %v2141_v50 }
 0x861   :  { %2167 = vrot.lane.b32.xlu1 %v1927_v39, %s4917_s9 }
 0x862   :  { %2165 = vrot.lane.b32.xlu0 %v1922_v45, %s4917_s9  ;;  %v4631_v15 = vpack.c.bf16 %v2147_v8, %v2142_v11  ;;  %v4759_v44 = vpack.i.bf16 %v2147_v8, %v2142_v11 }
 0x8c7   :  { %v2160_v57 = vpop.permute.xlu1 %2159 }
 0x8c8   :  { %v2158_v59 = vpop.permute.xlu0 %2157  ;;  %4420 = vmatmul.mubr.msk.f32.vlgmr.msra.gmra.mrb[28].mxu1 %vm362_vm2, %v2160_v57 }
 0x8c9   :  { %4618 = vmatpush3.bf16.xpose.msk.msra.mxu1 %vm5335_vm6, %v4616_v56  ;;  %4413 = vmatmul.mubr.msk.f32.vlgmr.msra.gmra.mrb[24].mxu0 %vm362_vm2, %v2158_v59 }
 0x8ca   :  { %4614 = vmatpush3.bf16.xpose.msk.msra.mxu0 %vm5335_vm6, %v4612_v58  ;;  %4433 = vmatprep.mubr.msk.f32.mxu1 %vm4916_vm1, %v4913_v20 }
 0x8cb   :  { %v4751_v61 = vpop.permute.xlu1 %4750  ;;  %4623 = vmatprep.subr.bf16.mxu1 %v4922_v60  ;;  %4426 = vmatprep.mubr.msk.f32.mxu0 %vm4916_vm1, %v4913_v20 }
 0x8cc   :  { %v4753_v42 = vunpack.i.h.bf16 %v4751_v61  ;;  %v4752_v62 = vunpack.i.l.bf16 %v4751_v61  ;;  %v4746_v63 = vpop.permute.xlu0 %4745  ;;  %4619 = vmatprep.subr.bf16.mxu0 %v4922_v60 }
 0x8cd   :  { %v4748_v40 = vunpack.i.h.bf16 %v4746_v63  ;;  %v4747_v0 = vunpack.i.l.bf16 %v4746_v63 }
 0x8ce   :  { %v4624_v1 = vpack.c.bf16 %v4753_v42, %v4752_v62 }
 0x8cf   :  { %v4620_v2 = vpack.c.bf16 %v4748_v40, %v4747_v0  ;;  %v2164_v3 = vpop.permute.xlu1 %2163 }
 0x8d0   :  { %v2162_v7 = vpop.permute.xlu0 %2161  ;;  %4434 = vmatmul.mubr.msk.f32.vlgmr.msra.gmra.mrb[30].mxu1 %vm362_vm2, %v2164_v3 }
 0x8d1   :  { %4626 = vmatpush3.bf16.xpose.msk.msra.mxu1 %vm5335_vm6, %v4624_v1  ;;  %4427 = vmatmul.mubr.msk.f32.vlgmr.msra.gmra.mrb[26].mxu0 %vm362_vm2, %v2162_v7 }
 0x8d2   :  { %4622 = vmatpush3.bf16.xpose.msk.msra.mxu0 %vm5335_vm6, %v4620_v2  ;;  %4447 = vmatprep.mubr.msk.f32.mxu1 %vm4916_vm1, %v4913_v20 }
 0x8d3   :  { %4440 = vmatprep.mubr.msk.f32.mxu0 %vm4916_vm1, %v4913_v20  ;;  %4627 = vmatprep.subr.bf16.mxu0 %v4922_v60  ;;  %v2168_v18 = vpop.permute.xlu1 %2167 }
 0x8d4   :  { %4630 = vmatprep.subr.bf16.mxu1 %v4922_v60  ;;  %v2166_v19 = vpop.permute.xlu0 %2165 }
 0x8d8   :  { %4448 = vmatmul.mubr.msk.f32.vlgmr.msra.gmra.mrb[32].mxu1 %vm362_vm2, %v2168_v18 }
 0x8d9   :  { %4441 = vmatmul.mubr.msk.f32.vlgmr.msra.gmra.mrb[28].mxu0 %vm362_vm2, %v2166_v19  ;;  %4632 = vmatpush3.bf16.msra.mxu1 %v4631_v15 }
 0x8da   :  { %4629 = vmatpush3.bf16.msra.mxu0 %v4628_v16  ;;  %4461 = vmatprep.mubr.msk.f32.mxu1 %vm4916_vm1, %v4913_v20 }
 0x8db   :  { %4636 = vmatprep.subr.bf16.mxu1 %v4922_v60  ;;  %4454 = vmatprep.mubr.msk.f32.mxu0 %vm4916_vm1, %v4913_v20 }
 0x8dc   :  { %4633 = vmatprep.subr.bf16.mxu0 %v4922_v60 }
 0x928   :  { %v2385_v6 = vpop.f32.mrb[26].mxu1 }
 0x929   :  { %v2309_v10 = vpop.f32.mrb[22].mxu0  ;;  %v4407_v21 = vpop.f32.mrb[27].mxu1  ;;  %v2849_v22 = vsel %vm2845_vm7, %v2385_v6, -inf }
 0x92a   :  { %2850 = vmax.xlane.f32.xlu1 %v2849_v22  ;;  %v4400_v23 = vpop.f32.mrb[23].mxu0  ;;  %v2846_v24 = vsel %vm2845_vm7, %v2309_v10, -inf }
 0x92b   :  { %2847 = vmax.xlane.f32.xlu0 %v2846_v24 }
 0x99b   :  { %v2537_v25 = vpop.f32.mrb[28].mxu1 }
 0x99c   :  { %v2461_v26 = vpop.f32.mrb[24].mxu0  ;;  %v4421_v27 = vpop.f32.mrb[29].mxu1  ;;  %v2855_v5 = vsel %vm2845_vm7, %v2537_v25, -inf }
 0x99d   :  { %v4414_v9 = vpop.f32.mrb[25].mxu0  ;;  %v2852_v28 = vsel %vm2845_vm7, %v2461_v26, -inf }
 0x99e   :  { %2853 = vmax.xlane.f32.xlu0 %v2852_v28 }
 0x9a2   :  { %2856 = vmax.xlane.f32.xlu0 %v2855_v5 }
 0x9a3   :  { %v2689_v29 = vpop.f32.mrb[30].mxu1 }
 0x9a4   :  { %v2613_v30 = vpop.f32.mrb[26].mxu0  ;;  %v4435_v31 = vpop.f32.mrb[31].mxu1  ;;  %v2861_v32 = vsel %vm2845_vm7, %v2689_v29, -inf }
 0x9a5   :  { %v4428_v33 = vpop.f32.mrb[27].mxu0  ;;  %v2858_v34 = vsel %vm2845_vm7, %v2613_v30, -inf }
 0x9a6   :  { %2859 = vmax.xlane.f32.xlu1 %v2858_v34  ;;  %2862 = vmax.xlane.f32.xlu0 %v2861_v32 }
 0x9ab   :  { %v2841_v35 = vpop.f32.mrb[32].mxu1 }
 0x9ac   :  { %v2765_v36 = vpop.f32.mrb[28].mxu0  ;;  %v4449_v37 = vpop.f32.mrb[33].mxu1  ;;  %v2867_v38 = vsel %vm2845_vm7, %v2841_v35, -inf }
 0x9ad   :  { %v4442_v39 = vpop.f32.mrb[29].mxu0  ;;  %2868 = vmax.xlane.f32.xlu0 %v2867_v38  ;;  %v2864_v41 = vsel %vm2845_vm7, %v2765_v36, -inf }
 0x9ae   :  { %2865 = vmax.xlane.f32.xlu1 %v2864_v41 }
 0x9b7   :  { %v2851_v45 = vpop.xlane.xlu1 %2850 }
 0x9b8   :  { %v2871_v46 = vsub.f32 %v2385_v6, %v2851_v45  ;;  %v2848_v49 = vpop.xlane.xlu0 %2847 }
 0x9b9   :  { %v2870_v50 = vsub.f32 %v2309_v10, %v2848_v49 }
 0x9ba   :  { %v2880_v47 = vmul.f32 1.442695, %v2871_v46 }
 0x9bb   :  { %v2878_v51 = vmul.f32 1.442695, %v2870_v50 }
 0x9bc   :  { %4820 = vpow2.f32 %v2880_v47 }
 0x9bd   :  { %4822 = vpow2.f32 %v2878_v51 }
 0x9bf   :  { %4755 = vrot.lane.b32.xlu1 %v4754_v43, %s4915_s5 }
 0x9c3   :  { %4765 = vrot.lane.b32.xlu1 %v4754_v43, %s4914_s0  ;;  %4760 = vrot.lane.b32.xlu0 %v4759_v44, %s4915_s5 }
 0x9c6   :  { %v5415_v52 = vpop.eup %4820 }
 0x9c7   :  { %4770 = vrot.lane.b32.xlu1 %v4759_v44, %s4914_s0  ;;  %v2897_v53 = vsel %vm2845_vm7, %v5415_v52, 0.0  ;;  %v5419_v54 = vpop.eup %4822 }
 0x9c8   :  { %v2894_v48 = vsel %vm2845_vm7, %v5419_v54, 0.0 }
 0x9e2   :  { %2898 = vadd.xlane.f32.xlu0 %v2897_v53 }
 0x9eb   :  { %2895 = vadd.xlane.f32.xlu1 %v2894_v48 }
 0xa2b   :  { %v2854_v55 = vpop.xlane.xlu0 %2853 }
 0xa2c   :  { %v2872_v56 = vsub.f32 %v2461_v26, %v2854_v55 }
 0xa2e   :  { %v2882_v57 = vmul.f32 1.442695, %v2872_v56 }
 0xa2f   :  { %v2857_v58 = vpop.xlane.xlu0 %2856 }
 0xa30   :  { %4824 = vpow2.f32 %v2882_v57  ;;  %v2873_v59 = vsub.f32 %v2537_v25, %v2857_v58 }
 0xa32   :  { %v2884_v61 = vmul.f32 1.442695, %v2873_v59 }
 0xa33   :  { %v2860_v42 = vpop.xlane.xlu1 %2859  ;;  %v2863_v62 = vpop.xlane.xlu0 %2862 }
 0xa34   :  { %4826 = vpow2.f32 %v2884_v61  ;;  %v2874_v63 = vsub.f32 %v2613_v30, %v2860_v42  ;;  %v2875_v40 = vsub.f32 %v2689_v29, %v2863_v62 }
 0xa36   :  { %v2886_v0 = vmul.f32 1.442695, %v2874_v63  ;;  %v2888_v1 = vmul.f32 1.442695, %v2875_v40 }
 0xa38   :  { %4828 = vpow2.f32 %v2886_v0 }
 0xa39   :  { %4830 = vpow2.f32 %v2888_v1 }
 0xa3a   :  { %v5423_v2 = vpop.eup %4824  ;;  %v2869_v3 = vpop.xlane.xlu0 %2868 }
 0xa3b   :  { %v2877_v4 = vsub.f32 %v2841_v35, %v2869_v3  ;;  %v2866_v7 = vpop.xlane.xlu1 %2865  ;;  %v2900_v8 = vsel %vm2845_vm7, %v5423_v2, 0.0 }
 0xa3c   :  { %v2876_v11 = vsub.f32 %v2765_v36, %v2866_v7  ;;  %2901 = vadd.xlane.f32.xlu1 %v2900_v8 }
 0xa3d   :  { %v2892_v13 = vmul.f32 1.442695, %v2877_v4 }
 0xa3e   :  { %v5427_v14 = vpop.eup %4826  ;;  %v2890_v15 = vmul.f32 1.442695, %v2876_v11  ;;  %v4761_v26 = vpop.permute.xlu0 %4760 }
 0xa3f   :  { %4832 = vpow2.f32 %v2892_v13  ;;  %v2903_v16 = vsel %vm2845_vm7, %v5427_v14, 0.0  ;;  %v4756_v25 = vpop.permute.xlu1 %4755  ;;  %v4763_v32 = vunpack.i.h.bf16 %v4761_v26  ;;  %v4762_v33 = vunpack.i.l.bf16 %v4761_v26 }
 0xa40   :  { %4834 = vpow2.f32 %v2890_v15  ;;  %2904 = vadd.xlane.f32.xlu0 %v2903_v16  ;;  %v4758_v41 = vunpack.i.h.bf16 %v4756_v25 }
 0xa41   :  { %v4637_v36 = vpack.c.bf16 %v4763_v32, %v4762_v33 }
 0xa42   :  { %v5431_v18 = vpop.eup %4828 }
 0xa43   :  { %v5433_v19 = vpop.eup %4830  ;;  %v2906_v6 = vsel %vm2845_vm7, %v5431_v18, 0.0  ;;  %v4766_v27 = vpop.permute.xlu1 %4765 }
 0xa44   :  { %2907 = vadd.xlane.f32.xlu1 %v2906_v6  ;;  %v2909_v10 = vsel %vm2845_vm7, %v5433_v19, 0.0  ;;  %v4768_v55 = vunpack.i.h.bf16 %v4766_v27  ;;  %v4767_v56 = vunpack.i.l.bf16 %v4766_v27 }
 0xa45   :  { %2910 = vadd.xlane.f32.xlu0 %v2909_v10 }
 0xa46   :  { %v4640_v40 = vpack.c.bf16 %v4768_v55, %v4767_v56 }
 0xa47   :  { %v5449_v28 = vpop.permute.xlu1 %4770 }
 0xa48   :  { %v4773_v0 = vunpack.i.h.bf16 %v5449_v28  ;;  %v4772_v1 = vunpack.i.l.bf16 %v5449_v28 }
 0xa49   :  { %v5439_v21 = vpop.eup %4832 }
 0xa4a   :  { %v5441_v22 = vpop.eup %4834  ;;  %v2915_v23 = vsel %vm2845_vm7, %v5439_v21, 0.0  ;;  %v4643_v16 = vpack.c.bf16 %v4773_v0, %v4772_v1 }
 0xa4b   :  { %2916 = vadd.xlane.f32.xlu0 %v2915_v23  ;;  %v2912_v24 = vsel %vm2845_vm7, %v5441_v22, 0.0 }
 0xa4c   :  { %2913 = vadd.xlane.f32.xlu1 %v2912_v24 }
 0xa5d   :  { %4780 = vrot.lane.b32.xlu1 %v4759_v44, %s4917_s9 }
 0xa61   :  { %4775 = vrot.lane.b32.xlu0 %v4754_v43, %s4917_s9  ;;  %v4757_v43 = vunpack.i.l.bf16 %v4756_v25 }
 0xa63   :  { %v4634_v46 = vpack.c.bf16 %v4758_v41, %v4757_v43 }
 0xa6f   :  { %v2899_v9 = vpop.xlane.xlu0 %2898 }
 0xa70   :  { %4836 = vrcp.f32 %v2899_v9 }
 0xa78   :  { %v2896_v5 = vpop.xlane.xlu1 %2895 }
 0xa79   :  { %4838 = vrcp.f32 %v2896_v5 }
 0xa7a   :  { %v4837_v29 = vpop.eup %4836 }
 0xa7b   :  { %v2927_v30 = vmul.f32 %v4837_v29, %v2899_v9 }
 0xa7d   :  { %v2935_v31 = vsub.f32 2.0, %v2927_v30 }
 0xa7f   :  { %v2943_v34 = vmul.f32 %v4837_v29, %v2935_v31 }
 0xa81   :  { %v5452_v35 = vmul.f32 %v5415_v52, %v2943_v34 }
 0xa83   :  { %v4839_v37 = vpop.eup %4838  ;;  %4462 = vmatmul.mubr.msk.f32.vlgmr.msra.gmra.mrb[34].mxu1 %vm2845_vm7, %v5452_v35 }
 0xa84   :  { %v2926_v38 = vmul.f32 %v4839_v37, %v2896_v5  ;;  %4638 = vmatpush3.bf16.msra.mxu1 %v4637_v36  ;;  %4475 = vmatprep.mubr.msk.f32.mxu1 %vm4916_vm1, %v4913_v20 }
 0xa85   :  { %4642 = vmatprep.subr.bf16.mxu1 %v4922_v60 }
 0xa86   :  { %v2934_v39 = vsub.f32 2.0, %v2926_v38 }
 0xa88   :  { %v2942_v44 = vmul.f32 %v4839_v37, %v2934_v39 }
 0xa8a   :  { %v5460_v45 = vmul.f32 %v5419_v54, %v2942_v44 }
 0xa8c   :  { %4455 = vmatmul.mubr.msk.f32.vlgmr.msra.gmra.mrb[30].mxu0 %vm2845_vm7, %v5460_v45 }
 0xa8d   :  { %4635 = vmatpush3.bf16.msra.mxu0 %v4634_v46  ;;  %4468 = vmatprep.mubr.msk.f32.mxu0 %vm4916_vm1, %v4913_v20 }
 0xa8e   :  { %4639 = vmatprep.subr.bf16.mxu0 %v4922_v60 }
 0xac9   :  { %v2902_v47 = vpop.xlane.xlu1 %2901 }
 0xaca   :  { %4840 = vrcp.f32 %v2902_v47 }
 0xacd   :  { %v2905_v49 = vpop.xlane.xlu0 %2904 }
 0xace   :  { %4842 = vrcp.f32 %v2905_v49 }
 0xad1   :  { %v2908_v50 = vpop.xlane.xlu1 %2907 }
 0xad2   :  { %4844 = vrcp.f32 %v2908_v50  ;;  %v2911_v51 = vpop.xlane.xlu0 %2910 }
 0xad3   :  { %4846 = vrcp.f32 %v2911_v51 }
 0xad4   :  { %v4841_v52 = vpop.eup %4840 }
 0xad5   :  { %v2928_v53 = vmul.f32 %v4841_v52, %v2902_v47 }
 0xad7   :  { %v2936_v54 = vsub.f32 2.0, %v2928_v53 }
 0xad8   :  { %v4843_v48 = vpop.eup %4842  ;;  %v2917_v57 = vpop.xlane.xlu0 %2916 }
 0xad9   :  { %v2944_v58 = vmul.f32 %v4841_v52, %v2936_v54  ;;  %v2929_v59 = vmul.f32 %v4843_v48, %v2905_v49  ;;  %4848 = vrcp.f32 %v2917_v57  ;;  %v2914_v61 = vpop.xlane.xlu1 %2913  ;;  %v2152_v54 = vld [vmem:[%s5577_s19 + $0x10] sm:$0xff] }
 0xada   :  { %4850 = vrcp.f32 %v2914_v61 }
 0xadb   :  { %v2952_v42 = vmul.f32 %v5423_v2, %v2944_v58  ;;  %v2937_v62 = vsub.f32 2.0, %v2929_v59 }
 0xadc   :  { %v4845_v63 = vpop.eup %4844  ;;  %v4776_v8 = vpop.permute.xlu0 %4775 }
 0xadd   :  { %v4847_v3 = vpop.eup %4846  ;;  %v2945_v4 = vmul.f32 %v4843_v48, %v2937_v62  ;;  %v2930_v7 = vmul.f32 %v4845_v63, %v2908_v50  ;;  %4469 = vmatmul.mubr.msk.f32.vlgmr.msra.gmra.mrb[32].mxu0 %vm2845_vm7, %v2952_v42  ;;  %v4781_v13 = vpop.permute.xlu1 %4780  ;;  %v4778_v10 = vunpack.i.h.bf16 %v4776_v8  ;;  %v4777_v23 = vunpack.i.l.bf16 %v4776_v8  ;;  %v2150_v50 = vld [vmem:[%s5577_s19] sm:$0xff]  ;;  %v2153_v48 = vld [vmem:[%s5577_s19 + $0x18] sm:$0xff] }
 0xade   :  { %v2931_v11 = vmul.f32 %v4847_v3, %v2911_v51  ;;  %4641 = vmatpush3.bf16.msra.mxu0 %v4640_v40  ;;  %4482 = vmatprep.mubr.msk.f32.mxu0 %vm4916_vm1, %v4913_v20  ;;  %v4783_v25 = vunpack.i.h.bf16 %v4781_v13  ;;  %v4782_v26 = vunpack.i.l.bf16 %v4781_v13  ;;  %v2151_v51 = vld [vmem:[%s5577_s19 + $0x8] sm:$0xff]  ;;  %v4655_v56 = vpack.c.bf16 %v2153_v48, %v2152_v54 }
 0xadf   :  { %v2953_v2 = vmul.f32 %v5427_v14, %v2945_v4  ;;  %v2938_v15 = vsub.f32 2.0, %v2930_v7  ;;  %4645 = vmatprep.subr.bf16.mxu0 %v4922_v60  ;;  %v4646_v30 = vpack.c.bf16 %v4778_v10, %v4777_v23  ;;  %v4651_v53 = vpack.c.bf16 %v2151_v51, %v2150_v50  ;;  %v4090_v51 = vld [vmem:[%s5581_s7] ss:$0 sm:$0xff] }
 0xae0   :  { %v2939_v6 = vsub.f32 2.0, %v2931_v11  ;;  %v4649_v32 = vpack.c.bf16 %v4783_v25, %v4782_v26 }
 0xae1   :  { %v2946_v24 = vmul.f32 %v4845_v63, %v2938_v15  ;;  %4476 = vmatmul.mubr.msk.f32.vlgmr.msra.gmra.mrb[36].mxu1 %vm2845_vm7, %v2953_v2 }
 0xae2   :  { %v2947_v27 = vmul.f32 %v4847_v3, %v2939_v6  ;;  %4644 = vmatpush3.bf16.msra.mxu1 %v4643_v16  ;;  %4489 = vmatprep.mubr.msk.f32.mxu1 %vm4916_vm1, %v4913_v20 }
 0xae3   :  { %v4849_v9 = vpop.eup %4848  ;;  %v2954_v14 = vmul.f32 %v5431_v18, %v2946_v24  ;;  %4648 = vmatprep.subr.bf16.mxu1 %v4922_v60  ;;  %v3664_v60 = vadd.f32 %v2953_v2, %v5452_v35  ;;  %v4087_v2 = vld [vmem:[%s5578_s24] ss:$0 sm:$0xff] }
 0xae4   :  { %v4851_v28 = vpop.eup %4850  ;;  %v2955_v5 = vmul.f32 %v5433_v19, %v2947_v27  ;;  %v2933_v29 = vmul.f32 %v4849_v9, %v2917_v57  ;;  %v3663_v19 = vadd.f32 %v2952_v42, %v5460_v45 }
 0xae5   :  { %v2932_v31 = vmul.f32 %v4851_v28, %v2914_v61  ;;  %4483 = vmatmul.mubr.msk.f32.vlgmr.msra.gmra.mrb[34].mxu0 %vm2845_vm7, %v2954_v14 }
 0xae6   :  { %v2941_v33 = vsub.f32 2.0, %v2933_v29  ;;  %4490 = vmatmul.mubr.msk.f32.vlgmr.msra.gmra.mrb[38].mxu1 %vm2845_vm7, %v2955_v5  ;;  %4647 = vmatpush3.bf16.msra.mxu0 %v4646_v30  ;;  %v3666_v37 = vadd.f32 %v3664_v60, %v2955_v5  ;;  %v3665_v39 = vadd.f32 %v3663_v19, %v2954_v14  ;;  %v3719_v60 = vld [vmem:[%s5579_s30 + $0x10] sm:$0xff] }
 0xae7   :  { %v2940_v34 = vsub.f32 2.0, %v2932_v31  ;;  %4650 = vmatpush3.bf16.msra.mxu1 %v4649_v32  ;;  %4503 = vmatprep.mubr.msk.f32.mxu1 %vm4916_vm1, %v4913_v20  ;;  %v3717_v32 = vld [vmem:[%s5579_s30] sm:$0xff] }
 0xae8   :  { %v2949_v18 = vmul.f32 %v4849_v9, %v2941_v33  ;;  %4496 = vmatprep.mubr.msk.f32.mxu0 %vm4916_vm1, %v4913_v20  ;;  %4652 = vmatprep.subr.bf16.mxu0 %v4651_v53  ;;  %v3718_v33 = vld [vmem:[%s5579_s30 + $0x8] sm:$0xff] }
 0xae9   :  { %v2948_v36 = vmul.f32 %v4851_v28, %v2940_v34  ;;  %v4659_v34 = vpack.c.bf16 %v3718_v33, %v3717_v32 }
 0xaea   :  { %v2957_v38 = vmul.f32 %v5439_v21, %v2949_v18  ;;  %v3720_v18 = vld [vmem:[%s5579_s30 + $0x18] sm:$0xff] }
 0xaeb   :  { %v2956_v41 = vmul.f32 %v5441_v22, %v2948_v36  ;;  %4660 = vmatprep.subr.bf16.mxu1 %v4659_v34  ;;  %v4663_v19 = vpack.c.bf16 %v3720_v18, %v3719_v60  ;;  %v3811_v36 = vld [vmem:[%s5580_s12] sm:$0xff] }
 0xaec   :  { %v3668_v43 = vadd.f32 %v3666_v37, %v2957_v38  ;;  %4504 = vmatmul.mubr.msk.f32.vlgmr.msra.gmra.mrb[40].mxu1 %vm2845_vm7, %v2957_v38  ;;  %v3812_v37 = vld [vmem:[%s5580_s12 + $0x8] sm:$0xff]  ;;  %v3813_v38 = vld [vmem:[%s5580_s12 + $0x10] sm:$0xff] }
 0xaed   :  { %v3667_v44 = vadd.f32 %v3665_v39, %v2956_v41  ;;  %4497 = vmatmul.mubr.msk.f32.vlgmr.msra.gmra.mrb[36].mxu0 %vm2845_vm7, %v2956_v41  ;;  %4662 = vmatpush3.bf16.msra.mxu1 %v4659_v34  ;;  %v4667_v39 = vpack.c.bf16 %v3812_v37, %v3811_v36  ;;  %v3814_v41 = vld [vmem:[%s5580_s12 + $0x18] sm:$0xff] }
 0xaee   :  { %v3670_v35 = vmul.f32 0.25, %v3668_v43  ;;  %4654 = vmatpush3.bf16.msra.mxu0 %v4651_v53  ;;  %4664 = vmatprep.subr.bf16.mxu1 %v4663_v19  ;;  %v4671_v43 = vpack.c.bf16 %v3814_v41, %v3813_v38  ;;  %v4091_v53 = vld [vmem:[%s5582_s10] ss:$0 sm:$0xff] }
 0xaef   :  { %v3669_v46 = vmul.f32 0.25, %v3667_v44  ;;  %4656 = vmatprep.subr.bf16.mxu0 %v4655_v56  ;;  %v3815_v44 = vld [vmem:[%s5580_s12 + $0x20] sm:$0xff] }
 0xaf0   :  { %3957 = vst.msk [vmem:[#allocation3 + $0x8] sm:$0xff] %vm2845_vm7, %v3670_v35  ;;  %v3816_v35 = vld [vmem:[%s5580_s12 + $0x28] sm:$0xff] }
 0xaf1   :  { %3956 = vst.msk [vmem:[#allocation3] sm:$0xff] %vm2845_vm7, %v3669_v46  ;;  %4666 = vmatpush3.bf16.msra.mxu1 %v4663_v19  ;;  %v4675_v46 = vpack.c.bf16 %v3816_v35, %v3815_v44 }
 0xaf2   :  { %4658 = vmatpush3.bf16.msra.mxu0 %v4655_v56 }
 0xaf3   :  { %4668 = vmatprep.subr.bf16.mxu0 %v4667_v39 }
 0xb56   :  { %v3100_v20 = vpop.f32.mrb[34].mxu1 }
 0xb57   :  { %3543 = vst.msk [vmem:[#allocation2 + $0x8] sm:$0xff] %vm362_vm2, %v3100_v20  ;;  %v4463_v21 = vpop.f32.mrb[35].mxu1 }
 0xb5f   :  { %v3027_v22 = vpop.f32.mrb[30].mxu0 }
 0xb60   :  { %3542 = vst.msk [vmem:[#allocation2] sm:$0xff] %vm362_vm2, %v3027_v22  ;;  %v4456_v45 = vpop.f32.mrb[31].mxu0 }
 0xbb0   :  { %v3173_v47 = vpop.f32.mrb[32].mxu0 }
 0xbb1   :  { %v4470_v49 = vpop.f32.mrb[33].mxu0  ;;  %3546 = vrot.lane.b32.xlu0 %v3173_v47, %s4919_s25 }
 0xbb4   :  { %v3246_v52 = vpop.f32.mrb[36].mxu1 }
 0xbb5   :  { %3548 = vrot.lane.b32.xlu1 %v3246_v52, %s4919_s25  ;;  %v4477_v55 = vpop.f32.mrb[37].mxu1 }
 0xbb8   :  { %v3319_v57 = vpop.f32.mrb[34].mxu0 }
 0xbb9   :  { %v3392_v58 = vpop.f32.mrb[38].mxu1  ;;  %v4484_v59 = vpop.f32.mrb[35].mxu0  ;;  %3556 = vrot.lane.b32.xlu0 %v3319_v57, %s4920_s29 }
 0xbba   :  { %3558 = vrot.lane.b32.xlu1 %v3392_v58, %s4920_s29  ;;  %v4491_v61 = vpop.f32.mrb[39].mxu1  ;;  %v3817_v59 = vld [vmem:[%s5580_s12 + $0x30] sm:$0xff] }
 0xbbb   :  { %v3818_v61 = vld [vmem:[%s5580_s12 + $0x38] sm:$0xff] }
 0xbbf   :  { %v3538_v42 = vpop.f32.mrb[40].mxu1 }
 0xbc0   :  { %v3465_v62 = vpop.f32.mrb[36].mxu0  ;;  %3568 = vrot.lane.b32.xlu1 %v3538_v42, %s4921_s3  ;;  %v4505_v63 = vpop.f32.mrb[41].mxu1  ;;  %v4679_v42 = vpack.c.bf16 %v3818_v61, %v3817_v59 }
 0xbc1   :  { %3566 = vrot.lane.b32.xlu0 %v3465_v62, %s4921_s3  ;;  %v4498_v40 = vpop.f32.mrb[37].mxu0  ;;  %v4092_v62 = vld [vmem:[%s5583_s11] ss:$0 sm:$0xff] }
 0xc23   :  { %v3547_v0 = vpop.permute.xlu0 %3546 }
 0xc24   :  { %3552 = vst.msk [vmem:[#allocation2] sm:$0xff] %vm1675_vm3, %v3547_v0 }
 0xc27   :  { %v3549_v1 = vpop.permute.xlu1 %3548 }
 0xc28   :  { %3553 = vst.msk [vmem:[#allocation2 + $0x8] sm:$0xff] %vm1675_vm3, %v3549_v1 }
 0xc2b   :  { %v3557_v3 = vpop.permute.xlu0 %3556 }
 0xc2c   :  { %3562 = vst.msk [vmem:[#allocation2] sm:$0xff] %vm1686_vm4, %v3557_v3  ;;  %v3559_v4 = vpop.permute.xlu1 %3558 }
 0xc2d   :  { %3563 = vst.msk [vmem:[#allocation2 + $0x8] sm:$0xff] %vm1686_vm4, %v3559_v4 }
 0xc32   :  { %v3569_v7 = vpop.permute.xlu1 %3568 }
 0xc33   :  { %3573 = vst.msk [vmem:[#allocation2 + $0x8] sm:$0xff] %vm1697_vm5, %v3569_v7  ;;  %v3567_v8 = vpop.permute.xlu0 %3566  ;;  %v4095_v7 = vld [vmem:[%s5584_s15] ss:$0 sm:$0xff] }
 0xc34   :  { %3572 = vst.msk [vmem:[#allocation2] sm:$0xff] %vm1697_vm5, %v3567_v8 }
 0xc3a   :  { %v3575_v13 = vld [vmem:[#allocation2 + $0x8] sm:$0xff] }
 0xc3b   :  { %v3574_v11 = vld [vmem:[#allocation2] sm:$0xff] }
 0xc3c   :  { %4514 = vmatprep.mubr.msk.f32.mxu0 %vm147_vm0, %v3574_v11 }
 0xc3d   :  { %4515 = vmatmul.mubr.msk.f32.vlgmr.msra.gmra.mrb[38].mxu0 %vm147_vm0, %v3575_v13 }
 0xc3e   :  { %4670 = vmatpush3.bf16.msra.mxu0 %v4667_v39 }
 0xc3f   :  { %4672 = vmatprep.subr.bf16.mxu0 %v4671_v43 }
 0xc42   :  { %4674 = vmatpush3.bf16.msra.mxu0 %v4671_v43 }
 0xc43   :  { %4676 = vmatprep.subr.bf16.mxu0 %v4675_v46 }
 0xc46   :  { %4678 = vmatpush3.bf16.msra.mxu0 %v4675_v46 }
 0xc47   :  { %4680 = vmatprep.subr.bf16.mxu0 %v4679_v42 }
 0xc4a   :  { %4682 = vmatpush3.bf16.msra.mxu0 %v4679_v42 }
 0xd10   :  { %v4516_v15 = vpop.f32.mrb[38].mxu0 }
 0xd11   :  { %v3660_v16 = vadd.f32 %v4516_v15, %v4087_v2  ;;  %v3654_v6 = vpop.f32.mrb[39].mxu0 }
 0xd12   :  { %v3655_v10 = vadd.f32 %v4087_v2, %v3654_v6 }
 0xd13   :  { %v3672_v23 = vadd.f32 %v3660_v16, %v5319_v17 }
 0xd14   :  { %v3671_v24 = vadd.f32 %v3655_v10, %v5313_v12 }
 0xd15   :  { %v3678_v25 = vsel %vm147_vm0, %v3672_v23, 0.0 }
 0xd16   :  { %3679 = vadd.xlane.f32.xlu1 %v3678_v25  ;;  %v3675_v26 = vsel %vm147_vm0, %v3671_v24, 0.0 }
 0xd17   :  { %3676 = vadd.xlane.f32.xlu0 %v3675_v26 }
 0xda3   :  { %v3680_v27 = vpop.xlane.xlu1 %3679 }
 0xda4   :  { %v3682_v9 = vmul.f32 0.03125, %v3680_v27  ;;  %v3677_v14 = vpop.xlane.xlu0 %3676 }
 0xda5   :  { %v3681_v28 = vmul.f32 0.03125, %v3677_v14 }
 0xda6   :  { %v3684_v5 = vsub.f32 %v3672_v23, %v3682_v9 }
 0xda7   :  { %v3683_v29 = vsub.f32 %v3671_v24, %v3681_v28 }
 0xda8   :  { %v3686_v17 = vmul.f32 %v3684_v5, %v3684_v5 }
 0xda9   :  { %v3685_v30 = vmul.f32 %v3683_v29, %v3683_v29 }
 0xdaa   :  { %v3690_v31 = vsel %vm147_vm0, %v3686_v17, 0.0 }
 0xdab   :  { %v3687_v12 = vsel %vm147_vm0, %v3685_v30, 0.0 }
 0xdac   :  { %3688 = vadd.xlane.f32.xlu0 %v3687_v12 }
 0xdb0   :  { %3691 = vadd.xlane.f32.xlu0 %v3690_v31 }
 0xe39   :  { %v3689_v20 = vpop.xlane.xlu0 %3688 }
 0xe3a   :  { %v3693_v21 = vmul.f32 0.03125, %v3689_v20 }
 0xe3c   :  { %v3695_v22 = vadd.f32 1e-05, %v3693_v21 }
 0xe3d   :  { %v3692_v45 = vpop.xlane.xlu0 %3691 }
 0xe3e   :  { %4852 = vrsqrt.f32 %v3695_v22  ;;  %v3694_v47 = vmul.f32 0.03125, %v3692_v45 }
 0xe40   :  { %v3696_v49 = vadd.f32 1e-05, %v3694_v47 }
 0xe42   :  { %4854 = vrsqrt.f32 %v3696_v49 }
 0xe48   :  { %v4853_v50 = vpop.eup %4852 }
 0xe49   :  { %v3699_v52 = vmul.f32 %v4853_v50, %v3683_v29 }
 0xe4b   :  { %v3707_v54 = vmul.f32 %v4090_v51, %v3699_v52 }
 0xe4c   :  { %v4855_v48 = vpop.eup %4854 }
 0xe4d   :  { %v3700_v55 = vmul.f32 %v4855_v48, %v3684_v5  ;;  %v3715_v56 = vadd.f32 %v4091_v53, %v3707_v54 }
 0xe4f   :  { %v3708_v57 = vmul.f32 %v4090_v51, %v3700_v55  ;;  %4525 = vmatprep.mubr.msk.f32.mxu1 %vm147_vm0, %v3715_v56 }
 0xe51   :  { %v3716_v58 = vadd.f32 %v4091_v53, %v3708_v57 }
 0xe53   :  { %4526 = vmatmul.mubr.msk.f32.vlgmr.msra.gmra.mrb[42].mxu1 %vm147_vm0, %v3716_v58 }
 0xf26   :  { %v4527_v63 = vpop.f32.mrb[42].mxu1 }
 0xf27   :  { %v3806_v40 = vadd.f32 %v4527_v63, %v4092_v62  ;;  %v3800_v0 = vpop.f32.mrb[43].mxu1 }
 0xf28   :  { %v3801_v1 = vadd.f32 %v4092_v62, %v3800_v0 }
 0xf29   :  { %v3810_v4 = vmax.f32 %v3806_v40, 0.0 }
 0xf2a   :  { %v3809_v3 = vmax.f32 %v3801_v1, 0.0 }
 0xf2c   :  { %4544 = vmatprep.mubr.msk.f32.mxu0 %vm3826_vm8, %v3809_v3 }
 0xf2d   :  { %4545 = vmatmul.mubr.msk.f32.vlgmr.msra.gmra.mrb[40].mxu0 %vm3826_vm8, %v3810_v4 }
0x1000   :  { %v4546_v8 = vpop.f32.mrb[40].mxu0 }
0x1001   :  { %v3905_v11 = vadd.f32 %v4546_v8, %v4095_v7  ;;  %v3899_v13 = vpop.f32.mrb[41].mxu0 }
0x1002   :  { %v3900_v2 = vadd.f32 %v4095_v7, %v3899_v13 }
0x1003   :  { %v3909_v15 = vadd.f32 %v3905_v11, %v3716_v58 }
0x1004   :  { %v3908_v16 = vadd.f32 %v3900_v2, %v3715_v56 }
0x1005   :  { %v3915_v6 = vsel %vm147_vm0, %v3909_v15, 0.0 }
0x1006   :  { %3916 = vadd.xlane.f32.xlu0 %v3915_v6  ;;  %v3912_v10 = vsel %vm147_vm0, %v3908_v16, 0.0 }
0x1007   :  { %3913 = vadd.xlane.f32.xlu1 %v3912_v10 }
0x1093   :  { %v3917_v23 = vpop.xlane.xlu0 %3916 }
0x1094   :  { %v3919_v24 = vmul.f32 0.03125, %v3917_v23  ;;  %v3914_v25 = vpop.xlane.xlu1 %3913 }
0x1095   :  { %v3918_v26 = vmul.f32 0.03125, %v3914_v25 }
0x1096   :  { %v3921_v27 = vsub.f32 %v3909_v15, %v3919_v24 }
0x1097   :  { %v3920_v9 = vsub.f32 %v3908_v16, %v3918_v26 }
0x1098   :  { %v3923_v14 = vmul.f32 %v3921_v27, %v3921_v27 }
0x1099   :  { %v3922_v28 = vmul.f32 %v3920_v9, %v3920_v9 }
0x109a   :  { %v3927_v5 = vsel %vm147_vm0, %v3923_v14, 0.0 }
0x109b   :  { %3928 = vadd.xlane.f32.xlu0 %v3927_v5  ;;  %v3924_v29 = vsel %vm147_vm0, %v3922_v28, 0.0 }
0x109c   :  { %3925 = vadd.xlane.f32.xlu1 %v3924_v29 }
0x109d   :  { %4871 = shalt.err (!%p4868_p4)
}
0x109e   :  { %s4872_s23 = scalar_lea.hbm %s5078_s4, 256 }
0x109f   :  { %p4873_p5 = scmp.ne.s32.totalorder %s5078_s4, %s4872_s23  ;;  %p4876_p6 = scmp.lt.u32.totalorder %s4872_s23, %s5078_s4 }
0x10a1   :  { %p4878_p7 = pnand %p4876_p6, %p4873_p5 }
0x10a3   :  { %4881 = shalt.err (!%p4878_p7)
}
0x10a4   :  { %s4924_s26 = smov 128   ;;  %v4098_v60 = vld [vmem:[%s5063_s6] ss:$0 sm:$0xff] }
0x10a5   :  { %3971 = dma.vmem_to_hbm [thread:$0]  %s3966_s18, 256, %s5078_s4, [#allocation4], %s4924_s26, %s4924_s26, %s4919_s25  }
0x10a6   :  { %v4099_v36 = vld [vmem:[%s5068_s20] ss:$0 sm:$0xff] }
0x1128   :  { %v3929_v30 = vpop.xlane.xlu0 %3928 }
0x1129   :  { %v3931_v12 = vmul.f32 0.03125, %v3929_v30  ;;  %v3926_v17 = vpop.xlane.xlu1 %3925 }
0x112a   :  { %v3930_v31 = vmul.f32 0.03125, %v3926_v17 }
0x112b   :  { %v3933_v32 = vadd.f32 1e-05, %v3931_v12 }
0x112c   :  { %v3932_v33 = vadd.f32 1e-05, %v3930_v31 }
0x112d   :  { %4856 = vrsqrt.f32 %v3933_v32 }
0x112e   :  { %4858 = vrsqrt.f32 %v3932_v33 }
0x1137   :  { %v4857_v34 = vpop.eup %4856 }
0x1138   :  { %v4859_v18 = vpop.eup %4858  ;;  %v3937_v19 = vmul.f32 %v4857_v34, %v3921_v27 }
0x1139   :  { %v3936_v37 = vmul.f32 %v4859_v18, %v3920_v9 }
0x113a   :  { %v3945_v38 = vmul.f32 %v4098_v60, %v3937_v19 }
0x113b   :  { %v3944_v39 = vmul.f32 %v4098_v60, %v3936_v37 }
0x113c   :  { %v3953_v41 = vadd.f32 %v4099_v36, %v3945_v38 }
0x113d   :  { %v3952_v43 = vadd.f32 %v4099_v36, %v3944_v39 }
0x113e   :  { %3955 = vst.msk [vmem:[%s5073_s27 + $0x8] sm:$0xff] %vm147_vm0, %v3953_v41 }
0x113f   :  { %3954 = vst.msk [vmem:[%s5073_s27] sm:$0xff] %vm147_vm0, %v3952_v43 }
0x1140   :  { %4882 = dma.done.wait [#allocation4], 256  }
0x1141   :  { %4883 = vsyncadd [#allocation4], 4294967040 }
0x1142   :  { %3977 = vsyncpa [#allocation4], 1 }

</bundles_post_ra>
